<compile_context>
chip_gen: v7x
topology: tpu7x:2x2x1
jax: 0.10.0
libtpu: 0.0.40
codegen_flags: <defaults>
</compile_context>

<pallas_src>
import functools

import jax
import jax.numpy as jnp
from jax import lax
from jax.experimental import pallas as pl
from jax.experimental.pallas import tpu as pltpu


def _ms_nonlocal_kernel(xq_ref, xk_ref,
                        wt_ref, bt_ref,
                        wpg_ref, bpg_ref,
                        ww_ref, bw_ref,
                        o_ref,
                        theta_s, m_s, acc_s,
                        *, c1, c2, k_block, hw_valid, need_mask):
    """xq_ref: (Cin, QB)  xk_ref: (Cin, KB)  o_ref: (Cout, QB)
    grid = (batch, num_q_blocks, num_k_blocks) with the k axis innermost."""
    k = pl.program_id(2)
    nk = pl.num_programs(2)

    @pl.when(k == 0)
    def _init():
        # theta^T for this query block; the c1^-0.5 scale is pre-folded into
        # wt/bt.  bf16 MXU operands, f32 accumulate, theta stored as bf16.
        th = (jnp.dot(wt_ref[...], xq_ref[...],
                      preferred_element_type=jnp.float32)
              + bt_ref[...])                                        # (c1, QB) f32
        theta_s[...] = th.astype(jnp.bfloat16)
        m_s[...] = jnp.full(m_s.shape, -jnp.inf, dtype=jnp.float32)
        acc_s[...] = jnp.zeros(acc_s.shape, dtype=jnp.float32)

    # Fused phi / g / ones projection: one MXU push.  Last wpg row is zero with
    # bias 1, so pg[c1+c2] == 1 and dot(g_ext, p) also yields sum_k p.
    pg = (jnp.dot(wpg_ref[...], xk_ref[...],
                  preferred_element_type=jnp.float32)
          + bpg_ref[...])                                           # (c1+c2+1, KB) f32
    phi_t = pg[:c1].astype(jnp.bfloat16)                            # (c1, KB)
    g_ext = pg[c1:].astype(jnp.bfloat16)                            # (c2+1, KB)

    # Scores, key-major so per-query stats live on the lane axis:
    #   s_t[kk, q] = sum_c phi_t[c, kk] * theta_t[c, q]
    s_t = lax.dot_general(phi_t, theta_s[...],
                          dimension_numbers=(((0,), (0,)), ((), ())),
                          preferred_element_type=jnp.float32)       # (KB, QB) f32

    if need_mask:
        # Padded key positions (global key index >= hw_valid) -> -inf.
        key_idx = k * k_block + lax.broadcasted_iota(jnp.int32, s_t.shape, 0)
        s_t = jnp.where(key_idx < hw_valid, s_t, -jnp.inf)

    # Online softmax update (f32 bookkeeping, bf16 PV operands).
    m_prev = m_s[...]                                               # (1, QB)
    m_new = jnp.maximum(m_prev, jnp.max(s_t, axis=0, keepdims=True))
    alpha = jnp.exp(m_prev - m_new)
    p = jnp.exp(s_t - m_new).astype(jnp.bfloat16)                   # (KB, QB)
    acc_s[...] = alpha * acc_s[...] + jnp.dot(
        g_ext, p, preferred_element_type=jnp.float32)               # (c2+1, QB)
    m_s[...] = m_new

    @pl.when(k == nk - 1)
    def _finalize():
        acc = acc_s[...]                                            # (c2+1, QB)
        inv_l = pl.reciprocal(acc[c2:, :], approx=True)             # (1, QB)
        y_t = (acc[:c2, :] * inv_l).astype(jnp.bfloat16)            # (c2, QB)
        # Output projection; BatchNorm affine pre-folded into ww/bw.
        out_t = (jnp.dot(ww_ref[...], y_t,
                         preferred_element_type=jnp.float32)
                 + bw_ref[...])                                     # (Cout, QB)
        o_ref[...] = out_t.astype(o_ref.dtype)


def ms_nonlocal_block(x_nchw, params, inter_channels, k_block=256, q_block=256):
    """x_nchw: (N, Cin, H, W).  Returns (N, Cout, H, W)."""
    wt, bt, wp, bp, wg, bg, ww, bw, bn_scale, bn_shift = params
    N, Cin, H, W = x_nchw.shape
    HW = H * W
    c1 = wt.shape[1]
    c2 = wg.shape[1]
    Cout = ww.shape[1]
    out_dtype = x_nchw.dtype

    # ---- one-time parameter folding (constants, not per-call ops) ----------
    scale = float(inter_channels) ** -0.5
    wt_t = (wt * scale).T.astype(jnp.bfloat16)                       # (c1, Cin)
    bt_t = (bt * scale).T.astype(jnp.float32)                        # (c1, 1)
    # phi / g / ones-row fused projection.
    wpg = jnp.concatenate(
        [wp, wg, jnp.zeros((Cin, 1), jnp.float32)], axis=1)
    bpg = jnp.concatenate(
        [bp, bg, jnp.ones((1, 1), jnp.float32)], axis=1)
    wpg_t = wpg.T.astype(jnp.bfloat16)                               # (c1+c2+1, Cin)
    bpg_t = bpg.T.astype(jnp.float32)                                # (c1+c2+1, 1)
    ww_t = (ww * bn_scale).T.astype(jnp.bfloat16)                    # (Cout, c2)
    bw_t = (bw * bn_scale + bn_shift).T.astype(jnp.float32)          # (Cout, 1)

    # ---- NCHW flat spatial, zero-padded to a multiple of 128, bf16 ---------
    HW_pad = -(-HW // 128) * 128
    x = x_nchw.reshape(N, Cin, HW)
    if HW_pad != HW:
        x = jnp.pad(x, ((0, 0), (0, 0), (0, HW_pad - HW)))
    x = x.astype(jnp.bfloat16)

    kb = k_block if HW_pad % k_block == 0 else 128
    qb = q_block if HW_pad % q_block == 0 else 128
    nk = HW_pad // kb
    nq = HW_pad // qb

    kernel = functools.partial(
        _ms_nonlocal_kernel, c1=c1, c2=c2, k_block=kb, hw_valid=HW,
        need_mask=(HW_pad != HW))

    def weight_spec(a):
        return pl.BlockSpec(a.shape, lambda b, q, k: (0, 0))

    flops = 2 * N * (HW_pad * Cin * c1
                     + nq * HW_pad * Cin * (c1 + c2 + 1)
                     + HW_pad * HW_pad * c1
                     + HW_pad * HW_pad * (c2 + 1)
                     + HW_pad * c2 * Cout)
    transcendentals = N * (HW_pad * HW_pad + nk * HW_pad)
    bytes_accessed = (2 * 2 * N * Cin * HW_pad          # x read twice (bf16)
                      + 4 * N * Cout * HW_pad           # output (f32)
                      + 2 * (wt_t.size + wpg_t.size + ww_t.size)
                      + 4 * (bt_t.size + bpg_t.size + bw_t.size))

    out = pl.pallas_call(
        kernel,
        out_shape=jax.ShapeDtypeStruct((N, Cout, HW_pad), out_dtype),
        grid_spec=pltpu.PrefetchScalarGridSpec(
            num_scalar_prefetch=0,
            grid=(N, nq, nk),
            in_specs=[
                # query-side x tile (constant over k -> fetched once per q)
                pl.BlockSpec((pl.Squeezed(), Cin, qb),
                             lambda b, q, k: (b, 0, q)),
                # key-side x tile (pipelined over k)
                pl.BlockSpec((pl.Squeezed(), Cin, kb),
                             lambda b, q, k: (b, 0, k)),
                weight_spec(wt_t), weight_spec(bt_t),
                weight_spec(wpg_t), weight_spec(bpg_t),
                weight_spec(ww_t), weight_spec(bw_t),
            ],
            out_specs=pl.BlockSpec((pl.Squeezed(), Cout, qb),
                                   lambda b, q, k: (b, 0, q)),
            scratch_shapes=[
                pltpu.VMEM((c1, qb), jnp.bfloat16),      # theta^T (resident over k)
                pltpu.VMEM((1, qb), jnp.float32),        # running max m
                pltpu.VMEM((c2 + 1, qb), jnp.float32),   # running [acc ; l]
            ]),
        compiler_params=pltpu.CompilerParams(
            dimension_semantics=("parallel", "parallel", "arbitrary"),
            # Below v7x's 64 MiB physical VMEM, plenty of headroom on v5e/v6e.
            vmem_limit_bytes=48 * 1024 * 1024),
        cost_estimate=pl.CostEstimate(
            flops=int(flops),
            transcendentals=int(transcendentals),
            bytes_accessed=int(bytes_accessed)),
    )(x, x, wt_t, bt_t, wpg_t, bpg_t, ww_t, bw_t)

    return out[:, :, :HW].reshape(N, Cout, H, W)


def ms_nonlocal_reference(x_nchw, params, inter_channels):
    """Pure-JAX reference mirroring the PyTorch forward (scale=1)."""
    wt, bt, wp, bp, wg, bg, ww, bw, bn_scale, bn_shift = params
    N, Cin, H, W = x_nchw.shape
    x = jnp.transpose(x_nchw, (0, 2, 3, 1)).reshape(N, H * W, Cin).astype(jnp.float32)

    theta = x @ wt + bt                      # (N, HW, c1)
    phi = x @ wp + bp                        # (N, HW, c1)
    g = x @ wg + bg                          # (N, HW, c2)

    f = jnp.einsum('nqc,nkc->nqk', theta, phi) * (float(inter_channels) ** -0.5)
    attn = jax.nn.softmax(f, axis=-1)
    y = jnp.einsum('nqk,nkc->nqc', attn, g)  # (N, HW, c2)

    out = y @ ww + bw                        # (N, HW, Cout)
    out = out * bn_scale + bn_shift
    Cout = ww.shape[1]
    return jnp.transpose(out.reshape(N, H, W, Cout), (0, 3, 1, 2)).astype(x_nchw.dtype)


def make_params(key, in_channels, c1, c2, out_channels):
    """Deterministic parameter init (shapes from the module's __init__).
    Conv weights stored as (Cin, Cout) matrices (1x1 convs), biases as (1, Cout)."""
    ks = jax.random.split(key, 10)
    f32 = jnp.float32

    wt = 0.3 * jax.random.normal(ks[0], (in_channels, c1), f32)
    bt = 0.1 * jax.random.normal(ks[1], (1, c1), f32)
    wp = 0.3 * jax.random.normal(ks[2], (in_channels, c1), f32)
    bp = 0.1 * jax.random.normal(ks[3], (1, c1), f32)
    wg = 0.3 * jax.random.normal(ks[4], (in_channels, c2), f32)
    bg = 0.1 * jax.random.normal(ks[5], (1, c2), f32)
    ww = 0.3 * jax.random.normal(ks[6], (c2, out_channels), f32)
    bw = 0.1 * jax.random.normal(ks[7], (1, out_channels), f32)

    # BatchNorm2d params (inference mode), folded to per-channel scale/shift.
    gamma = 1.0 + 0.1 * jax.random.normal(ks[8], (1, out_channels), f32)
    beta = 0.1 * jax.random.normal(ks[9], (1, out_channels), f32)
    running_mean = jnp.linspace(-0.2, 0.2, out_channels, dtype=f32)[None, :]
    running_var = jnp.linspace(0.5, 1.5, out_channels, dtype=f32)[None, :]
    eps = 1e-5
    bn_scale = gamma / jnp.sqrt(running_var + eps)
    bn_shift = beta - running_mean * bn_scale

    return (wt, bt, wp, bp, wg, bg, ww, bw, bn_scale, bn_shift)


if __name__ == "__main__":
    # Module config: in_channels=4, c1=8, c2=8, out_channels=in_channels,
    # mode='embedded_gaussian', use_g=True, use_w=True, scale=1.
    Cin = 4
    c1, c2 = 8, 8
    out_channels = Cin

    key = jax.random.PRNGKey(0)
    k_x, k_p, k_x2 = jax.random.split(key, 3)
    params = make_params(k_p, Cin, c1, c2, out_channels)

    # Tolerance loosened vs the f32 version: bf16 MXU operands (f32 accumulate)
    # plus the EUP approx reciprocal add ~1e-3 - 1e-2 relative error.
    rtol = atol = 2e-2

    # Case 1: HW already a multiple of 128 (no padding / no mask path).
    N, H, W = 2, 16, 16
    x = jax.random.normal(k_x, (N, Cin, H, W), jnp.float32)
    out = jax.block_until_ready(ms_nonlocal_block(x, params, inter_channels=c1))
    ref = ms_nonlocal_reference(x, params, inter_channels=c1)
    assert out.shape == (N, out_channels, H, W), out.shape
    assert jnp.allclose(out, ref, rtol=rtol, atol=atol), \
        f"case1 max abs err = {jnp.max(jnp.abs(out - ref))}"

    # Case 2: HW not a multiple of 128 -> exercises padding + key masking.
    N2, H2, W2 = 2, 12, 12
    x2 = jax.random.normal(k_x2, (N2, Cin, H2, W2), jnp.float32)
    out2 = jax.block_until_ready(ms_nonlocal_block(x2, params, inter_channels=c1))
    ref2 = ms_nonlocal_reference(x2, params, inter_channels=c1)
    assert out2.shape == (N2, out_channels, H2, W2), out2.shape
    assert jnp.allclose(out2, ref2, rtol=rtol, atol=atol), \
        f"case2 max abs err = {jnp.max(jnp.abs(out2 - ref2))}"

    print("KERNEL_OK")
</pallas_src>

<mosaic_0001>
module attributes {stable_mosaic.version = 11 : i64} {
  func.func @_ms_nonlocal_kernel(%arg0: i32, %arg1: i32, %arg2: i32, %arg3: memref<1x4x256xbf16, #tpu.memory_space<vmem>>, %arg4: memref<1x4x256xbf16, #tpu.memory_space<vmem>>, %arg5: memref<8x4xbf16, #tpu.memory_space<vmem>>, %arg6: memref<8x1xf32, #tpu.memory_space<vmem>>, %arg7: memref<17x4xbf16, #tpu.memory_space<vmem>>, %arg8: memref<17x1xf32, #tpu.memory_space<vmem>>, %arg9: memref<4x8xbf16, #tpu.memory_space<vmem>>, %arg10: memref<4x1xf32, #tpu.memory_space<vmem>>, %arg11: memref<1x4x256xf32, #tpu.memory_space<vmem>>, %arg12: memref<8x256xbf16, #tpu.memory_space<vmem>>, %arg13: memref<1x256xf32, #tpu.memory_space<vmem>>, %arg14: memref<9x256xf32, #tpu.memory_space<vmem>>) attributes {dimension_semantics = [#tpu.dimension_semantics<parallel>, #tpu.dimension_semantics<parallel>, #tpu.dimension_semantics<arbitrary>], iteration_bounds = array<i64: 2, 1, 1>, scalar_prefetch = 0 : i64, scratch_operands = 3 : i64, tpu.core_type = #tpu.core_type<tc>, window_params = [{transform_indices = @transform_0, window_bounds = array<i64: 1, 4, 256>}, {transform_indices = @transform_1, window_bounds = array<i64: 1, 4, 256>}, {pipeline_mode = #tpu.pipeline_mode<synchronous>, transform_indices = @transform_2, window_bounds = array<i64: 8, 4>}, {pipeline_mode = #tpu.pipeline_mode<synchronous>, transform_indices = @transform_3, window_bounds = array<i64: 8, 1>}, {pipeline_mode = #tpu.pipeline_mode<synchronous>, transform_indices = @transform_4, window_bounds = array<i64: 17, 4>}, {pipeline_mode = #tpu.pipeline_mode<synchronous>, transform_indices = @transform_5, window_bounds = array<i64: 17, 1>}, {pipeline_mode = #tpu.pipeline_mode<synchronous>, transform_indices = @transform_6, window_bounds = array<i64: 4, 8>}, {pipeline_mode = #tpu.pipeline_mode<synchronous>, transform_indices = @transform_7, window_bounds = array<i64: 4, 1>}, {transform_indices = @transform_8, window_bounds = array<i64: 1, 4, 256>}]} {
    %c0_i32 = arith.constant 0 : i32
    %0 = arith.cmpi eq, %arg2, %c0_i32 : i32
    %1 = arith.extui %0 : i1 to i32
    %c0_i32_0 = arith.constant 0 : i32
    %2 = arith.cmpi ne, %1, %c0_i32_0 : i32
    scf.if %2 {
      %c0_22 = arith.constant 0 : index
      %c0_23 = arith.constant 0 : index
      %36 = vector.load %arg5[%c0_22, %c0_23] : memref<8x4xbf16, #tpu.memory_space<vmem>>, vector<8x4xbf16>
      %c0_24 = arith.constant 0 : index
      %c0_25 = arith.constant 0 : index
      %c0_26 = arith.constant 0 : index
      %37 = vector.load %arg3[%c0_24, %c0_25, %c0_26] : memref<1x4x256xbf16, #tpu.memory_space<vmem>>, vector<1x4x256xbf16>
      %38 = vector.shape_cast %37 : vector<1x4x256xbf16> to vector<4x256xbf16>
      %cst_27 = arith.constant dense<0.000000e+00> : vector<8x256xf32>
      %39 = tpu.matmul %36, %38, %cst_27 {dimension_numbers = #tpu.dot_dimension_numbers<[1], [0], [0], [1], [0, 0, 1, 1], [], []>} : vector<8x4xbf16>, vector<4x256xbf16>, vector<8x256xf32> -> vector<8x256xf32>
      %c0_28 = arith.constant 0 : index
      %c0_29 = arith.constant 0 : index
      %40 = vector.load %arg6[%c0_28, %c0_29] : memref<8x1xf32, #tpu.memory_space<vmem>>, vector<8x1xf32>
      %41 = vector.broadcast %40 : vector<8x1xf32> to vector<8x256xf32>
      %42 = arith.addf %39, %41 : vector<8x256xf32>
      %43 = arith.truncf %42 : vector<8x256xf32> to vector<8x256xbf16>
      %c0_30 = arith.constant 0 : index
      %c0_31 = arith.constant 0 : index
      %44 = vector.load %arg12[%c0_30, %c0_31] : memref<8x256xbf16, #tpu.memory_space<vmem>>, vector<8x256xbf16>
      tpu.vector_store %arg12[%c0_30, %c0_31], %43 {strides = array<i32>} : memref<8x256xbf16, #tpu.memory_space<vmem>>, vector<8x256xbf16>,
      %cst_32 = arith.constant 0xFF800000 : f32
      %45 = vector.broadcast %cst_32 : f32 to vector<1x256xf32>
      %c0_33 = arith.constant 0 : index
      %c0_34 = arith.constant 0 : index
      %46 = vector.load %arg13[%c0_33, %c0_34] : memref<1x256xf32, #tpu.memory_space<vmem>>, vector<1x256xf32>
      tpu.vector_store %arg13[%c0_33, %c0_34], %45 {strides = array<i32>} : memref<1x256xf32, #tpu.memory_space<vmem>>, vector<1x256xf32>,
      %cst_35 = arith.constant 0.000000e+00 : f32
      %47 = vector.broadcast %cst_35 : f32 to vector<9x256xf32>
      %c0_36 = arith.constant 0 : index
      %c0_37 = arith.constant 0 : index
      %48 = vector.load %arg14[%c0_36, %c0_37] : memref<9x256xf32, #tpu.memory_space<vmem>>, vector<9x256xf32>
      tpu.vector_store %arg14[%c0_36, %c0_37], %47 {strides = array<i32>} : memref<9x256xf32, #tpu.memory_space<vmem>>, vector<9x256xf32>,
    } else {
    }
    %c0 = arith.constant 0 : index
    %c0_1 = arith.constant 0 : index
    %3 = vector.load %arg7[%c0, %c0_1] : memref<17x4xbf16, #tpu.memory_space<vmem>>, vector<17x4xbf16>
    %c0_2 = arith.constant 0 : index
    %c0_3 = arith.constant 0 : index
    %c0_4 = arith.constant 0 : index
    %4 = vector.load %arg4[%c0_2, %c0_3, %c0_4] : memref<1x4x256xbf16, #tpu.memory_space<vmem>>, vector<1x4x256xbf16>
    %5 = vector.shape_cast %4 : vector<1x4x256xbf16> to vector<4x256xbf16>
    %cst = arith.constant dense<0.000000e+00> : vector<17x256xf32>
    %6 = tpu.matmul %3, %5, %cst {dimension_numbers = #tpu.dot_dimension_numbers<[1], [0], [0], [1], [0, 0, 1, 1], [], []>} : vector<17x4xbf16>, vector<4x256xbf16>, vector<17x256xf32> -> vector<17x256xf32>
    %c0_5 = arith.constant 0 : index
    %c0_6 = arith.constant 0 : index
    %7 = vector.load %arg8[%c0_5, %c0_6] : memref<17x1xf32, #tpu.memory_space<vmem>>, vector<17x1xf32>
    %8 = vector.broadcast %7 : vector<17x1xf32> to vector<17x256xf32>
    %9 = arith.addf %6, %8 : vector<17x256xf32>
    %10 = vector.extract_strided_slice %9 {offsets = [0, 0], sizes = [8, 256], strides = [1, 1]} : vector<17x256xf32> to vector<8x256xf32>
    %11 = arith.truncf %10 : vector<8x256xf32> to vector<8x256xbf16>
    %12 = vector.extract_strided_slice %9 {offsets = [8, 0], sizes = [9, 256], strides = [1, 1]} : vector<17x256xf32> to vector<9x256xf32>
    %13 = arith.truncf %12 : vector<9x256xf32> to vector<9x256xbf16>
    %c0_7 = arith.constant 0 : index
    %c0_8 = arith.constant 0 : index
    %14 = vector.load %arg12[%c0_7, %c0_8] : memref<8x256xbf16, #tpu.memory_space<vmem>>, vector<8x256xbf16>
    %cst_9 = arith.constant dense<0.000000e+00> : vector<256x256xf32>
    %15 = tpu.matmul %11, %14, %cst_9 {dimension_numbers = #tpu.dot_dimension_numbers<[0], [0], [1], [1], [0, 1, 1, 1], [], []>} : vector<8x256xbf16>, vector<8x256xbf16>, vector<256x256xf32> -> vector<256x256xf32>
    %c0_10 = arith.constant 0 : index
    %c0_11 = arith.constant 0 : index
    %16 = vector.load %arg13[%c0_10, %c0_11] : memref<1x256xf32, #tpu.memory_space<vmem>>, vector<1x256xf32>
    %cst_12 = arith.constant dense<0xFF800000> : vector<256xf32>
    %17 = vector.multi_reduction <maximumf>, %15, %cst_12 [0] : vector<256x256xf32> to vector<256xf32>
    %18 = vector.shape_cast %17 : vector<256xf32> to vector<1x256xf32>
    %19 = arith.maximumf %16, %18 : vector<1x256xf32>
    %20 = arith.subf %16, %19 : vector<1x256xf32>
    %21 = math.exp %20 : vector<1x256xf32>
    %22 = vector.broadcast %19 : vector<1x256xf32> to vector<256x256xf32>
    %23 = arith.subf %15, %22 : vector<256x256xf32>
    %24 = math.exp %23 : vector<256x256xf32>
    %25 = arith.truncf %24 : vector<256x256xf32> to vector<256x256xbf16>
    %c0_13 = arith.constant 0 : index
    %c0_14 = arith.constant 0 : index
    %26 = vector.load %arg14[%c0_13, %c0_14] : memref<9x256xf32, #tpu.memory_space<vmem>>, vector<9x256xf32>
    %27 = vector.broadcast %21 : vector<1x256xf32> to vector<9x256xf32>
    %28 = arith.mulf %27, %26 : vector<9x256xf32>
    %cst_15 = arith.constant dense<0.000000e+00> : vector<9x256xf32>
    %29 = tpu.matmul %13, %25, %cst_15 {dimension_numbers = #tpu.dot_dimension_numbers<[1], [0], [0], [1], [0, 0, 1, 1], [], []>} : vector<9x256xbf16>, vector<256x256xbf16>, vector<9x256xf32> -> vector<9x256xf32>
    %30 = arith.addf %28, %29 : vector<9x256xf32>
    %c0_16 = arith.constant 0 : index
    %c0_17 = arith.constant 0 : index
    %31 = vector.load %arg14[%c0_16, %c0_17] : memref<9x256xf32, #tpu.memory_space<vmem>>, vector<9x256xf32>
    tpu.vector_store %arg14[%c0_16, %c0_17], %30 {strides = array<i32>} : memref<9x256xf32, #tpu.memory_space<vmem>>, vector<9x256xf32>,
    %c0_18 = arith.constant 0 : index
    %c0_19 = arith.constant 0 : index
    %32 = vector.load %arg13[%c0_18, %c0_19] : memref<1x256xf32, #tpu.memory_space<vmem>>, vector<1x256xf32>
    tpu.vector_store %arg13[%c0_18, %c0_19], %19 {strides = array<i32>} : memref<1x256xf32, #tpu.memory_space<vmem>>, vector<1x256xf32>,
    %c0_i32_20 = arith.constant 0 : i32
    %33 = arith.cmpi eq, %arg2, %c0_i32_20 : i32
    %34 = arith.extui %33 : i1 to i32
    %c0_i32_21 = arith.constant 0 : i32
    %35 = arith.cmpi ne, %34, %c0_i32_21 : i32
    scf.if %35 {
      %c0_22 = arith.constant 0 : index
      %c0_23 = arith.constant 0 : index
      %36 = vector.load %arg14[%c0_22, %c0_23] : memref<9x256xf32, #tpu.memory_space<vmem>>, vector<9x256xf32>
      %37 = vector.extract_strided_slice %36 {offsets = [8, 0], sizes = [1, 256], strides = [1, 1]} : vector<9x256xf32> to vector<1x256xf32>
      %38 = tpu.reciprocal %37 {approx = true} : vector<1x256xf32> -> vector<1x256xf32>
      %39 = vector.extract_strided_slice %36 {offsets = [0, 0], sizes = [8, 256], strides = [1, 1]} : vector<9x256xf32> to vector<8x256xf32>
      %40 = vector.broadcast %38 : vector<1x256xf32> to vector<8x256xf32>
      %41 = arith.mulf %39, %40 : vector<8x256xf32>
      %42 = arith.truncf %41 : vector<8x256xf32> to vector<8x256xbf16>
      %c0_24 = arith.constant 0 : index
      %c0_25 = arith.constant 0 : index
      %43 = vector.load %arg9[%c0_24, %c0_25] : memref<4x8xbf16, #tpu.memory_space<vmem>>, vector<4x8xbf16>
      %cst_26 = arith.constant dense<0.000000e+00> : vector<4x256xf32>
      %44 = tpu.matmul %43, %42, %cst_26 {dimension_numbers = #tpu.dot_dimension_numbers<[1], [0], [0], [1], [0, 0, 1, 1], [], []>} : vector<4x8xbf16>, vector<8x256xbf16>, vector<4x256xf32> -> vector<4x256xf32>
      %c0_27 = arith.constant 0 : index
      %c0_28 = arith.constant 0 : index
      %45 = vector.load %arg10[%c0_27, %c0_28] : memref<4x1xf32, #tpu.memory_space<vmem>>, vector<4x1xf32>
      %46 = vector.broadcast %45 : vector<4x1xf32> to vector<4x256xf32>
      %47 = arith.addf %44, %46 : vector<4x256xf32>
      %c0_29 = arith.constant 0 : index
      %c0_30 = arith.constant 0 : index
      %c0_31 = arith.constant 0 : index
      %48 = vector.load %arg11[%c0_29, %c0_30, %c0_31] : memref<1x4x256xf32, #tpu.memory_space<vmem>>, vector<1x4x256xf32>
      %49 = vector.shape_cast %48 : vector<1x4x256xf32> to vector<4x256xf32>
      %50 = vector.shape_cast %47 : vector<4x256xf32> to vector<1x4x256xf32>
      tpu.vector_store %arg11[%c0_29, %c0_30, %c0_31], %50 {strides = array<i32>} : memref<1x4x256xf32, #tpu.memory_space<vmem>>, vector<1x4x256xf32>,
    } else {
    }
    return
  }
  func.func @transform_0(%arg0: i32, %arg1: i32, %arg2: i32) -> (i32, i32, i32) {
    %c0_i32 = arith.constant 0 : i32
    %c0_i32_0 = arith.constant 0 : i32
    return %arg0, %c0_i32, %arg1 : i32, i32, i32
  }
  func.func @transform_1(%arg0: i32, %arg1: i32, %arg2: i32) -> (i32, i32, i32) {
    %c0_i32 = arith.constant 0 : i32
    %c0_i32_0 = arith.constant 0 : i32
    return %arg0, %c0_i32, %arg2 : i32, i32, i32
  }
  func.func @transform_2(%arg0: i32, %arg1: i32, %arg2: i32) -> (i32, i32) {
    %c0_i32 = arith.constant 0 : i32
    %c0_i32_0 = arith.constant 0 : i32
    %c0_i32_1 = arith.constant 0 : i32
    return %c0_i32, %c0_i32_0 : i32, i32
  }
  func.func @transform_3(%arg0: i32, %arg1: i32, %arg2: i32) -> (i32, i32) {
    %c0_i32 = arith.constant 0 : i32
    %c0_i32_0 = arith.constant 0 : i32
    %c0_i32_1 = arith.constant 0 : i32
    return %c0_i32, %c0_i32_0 : i32, i32
  }
  func.func @transform_4(%arg0: i32, %arg1: i32, %arg2: i32) -> (i32, i32) {
    %c0_i32 = arith.constant 0 : i32
    %c0_i32_0 = arith.constant 0 : i32
    %c0_i32_1 = arith.constant 0 : i32
    return %c0_i32, %c0_i32_0 : i32, i32
  }
  func.func @transform_5(%arg0: i32, %arg1: i32, %arg2: i32) -> (i32, i32) {
    %c0_i32 = arith.constant 0 : i32
    %c0_i32_0 = arith.constant 0 : i32
    %c0_i32_1 = arith.constant 0 : i32
    return %c0_i32, %c0_i32_0 : i32, i32
  }
  func.func @transform_6(%arg0: i32, %arg1: i32, %arg2: i32) -> (i32, i32) {
    %c0_i32 = arith.constant 0 : i32
    %c0_i32_0 = arith.constant 0 : i32
    %c0_i32_1 = arith.constant 0 : i32
    return %c0_i32, %c0_i32_0 : i32, i32
  }
  func.func @transform_7(%arg0: i32, %arg1: i32, %arg2: i32) -> (i32, i32) {
    %c0_i32 = arith.constant 0 : i32
    %c0_i32_0 = arith.constant 0 : i32
    %c0_i32_1 = arith.constant 0 : i32
    return %c0_i32, %c0_i32_0 : i32, i32
  }
  func.func @transform_8(%arg0: i32, %arg1: i32, %arg2: i32) -> (i32, i32, i32) {
    %c0_i32 = arith.constant 0 : i32
    %c0_i32_0 = arith.constant 0 : i32
    return %arg0, %c0_i32, %arg1 : i32, i32, i32
  }
}

</mosaic_0001>

<bundles_post_ra>
// kernel: tpu_custom_call.1
= control target key start
LH: loop header
LB: loop body
LE: loop exit
PB: predicated region body
PF: predicated region fallthrough
CT: control target
= control target key end

     0   :  { %13 = vsyncpa [#allocation6], 0  ;;  %s2594_s0 = inlined_call_operand.vmem [shape: bf16[2,4,256], index: 0, kind: input, shape index: {}]   ;;  %s2595_s1 = inlined_call_operand.vmem [shape: bf16[2,4,256], index: 1, kind: input, shape index: {}]   ;;  %s2596_s2 = inlined_call_operand.vmem [shape: bf16[8,4], index: 2, kind: input, shape index: {}]   ;;  %s2597_s3 = inlined_call_operand.vmem [shape: f32[8,1], index: 3, kind: input, shape index: {}]   ;;  %s2598_s4 = inlined_call_operand.vmem [shape: bf16[17,4], index: 4, kind: input, shape index: {}]   ;;  %s2599_s5 = inlined_call_operand.vmem [shape: f32[17,1], index: 5, kind: input, shape index: {}]   ;;  %s2600_s6 = inlined_call_operand.vmem [shape: bf16[4,8], index: 6, kind: input, shape index: {}]   ;;  %s2601_s7 = inlined_call_operand.vmem [shape: f32[4,1], index: 7, kind: input, shape index: {}]   ;;  %s2602_s8 = inlined_call_operand.hbm [shape: f32[2,4,256], index: 8, kind: output, shape index: {}]  }
   0x1   :  { %15 = vsyncpa [#allocation6 + $0x1], 0  ;;  %s1847_s27 = smov 0   ;;  %s1849_s28 = smov 0  }
   0x2   :  { %s1851_s29 = smov 0   ;;  %s1853_s30 = smov 0  }
   0x3   :  { %s1855_s9 = smov 0   ;;  %s1857_s10 = smov 0  }
   0x4 LB: > { %s1469_s11 = sadd.s32 4294967295, %s1795_s10   ;;  %s1470_s12 = sadd.s32 4294967294, %s1795_s10   ;;  %s1795_s10 = sphi %s1857_s10, %s21_s10   ;;  %s1791_s9 = sphi %s1855_s9, %s2809_s9   ;;  %s1787_s30 = sphi %s1853_s30, %s2808_s30   ;;  %s1783_s29 = sphi %s1851_s29, %s2807_s29   ;;  %s1779_s28 = sphi %s1849_s28, %s2806_s28   ;;  %s1775_s27 = sphi %s1847_s27, %s2805_s27  }
   0x5   : > { %s40_s13 = sadd.s32 1, %s1791_s9  ;;  %s231_s14 = sadd.s32 1, %s1783_s29 }
   0x6   : > { %p42_p0 = scmp.ge.s32.totalorder %s40_s13, 2  ;;  %p241_p1 = scmp.ne.s32.totalorder %s1783_s29, %s1779_s28 }
   0x7   : > { %p242_p2 = scmp.eq.s32.totalorder %s1469_s11, 1  ;;  %p247_p3 = scmp.ne.s32.totalorder %s1779_s28, %s1775_s27 }
   0x8   : > { %s2811_s13 = smov (%p42_p0, %s40_s13), 0  ;;  %p248_p5 = scmp.eq.s32.totalorder %s1470_s12, 1 }
   0x9   : > { %p1887_p4 = por %p242_p2, %p241_p1  ;;  %s226_s16 = ssub.s32 %s1791_s9, %s2811_s13 }
   0xa   : > { %p1473_p6 = scmp.ge.s32.totalorder %s1795_s10, 1  ;;  %p229_p7 = scmp.eq.s32.totalorder %s226_s16, 0 }
   0xb   : > { %p1894_p8 = por %p248_p5, %p247_p3  ;;  %p310_p9 = scmp.lt.s32.totalorder %s1795_s10, 3 }
   0xc   : > { %s1900_s18 = scalar_select %p229_p7, %s1783_s29, %s231_s14  }
   0xd   : > { %p311_p10 = pnand %p1473_p6, %p310_p9 }
   0xf   : > { %314 = sbr.rel (%p311_p10) target bundleno = 1285 (0x505), region = 52 }
  0x16   : > { %p358_p11 = scmp.lt.s32.totalorder %s1787_s30, 1  ;;  %v2603_v0 = vmov 0   ;;  %v474_v1 = vld [vmem:[%s2599_s5] sm:$0xff]  ;;  %vm404_vm0 = vcmask 1041408   ;;  %v475_v8 = vld [vmem:[%s2599_s5 + $0x8] sm:$0xff]  ;;  %vm400_vm1 = vcmask 31744  }
  0x17   : > { %443 = vmatprep.mubr.bf16.mxu1 %v2603_v0  ;;  %1580 = vset.pattern.permute.xlu0 %v2603_v0  ;;  %v385_v2 = vld [vmem:[%s2597_s3] sm:$0xff]  ;;  %v476_v11 = vld [vmem:[%s2599_s5 + $0x10] sm:$0x1]  ;;  %v1582_v14 = vld [vmem:[%s2598_s4 + $0x8] ss:$0 sps:$4 sm:$0x11]  }
  0x18   : > { %s359_s19 = scalar_select %p358_p11, %s1787_s30, 1  ;;  %704 = vmatprep.mubr.bf16.mxu0 %v2603_v0  ;;  %479 = vperm.xlu0 %1580, %v474_v1   ;;  %v383_v9 = vld [vmem:[%s2596_s2] sm:$0xf]  ;;  %vm665_vm2 = vcmask 1043456   ;;  %vm616_vm3 = vcmask 64512  }
  0x19   : > { %v1581_v12 = vld [vmem:[%s2598_s4] sm:$0xff]   ;;  %s354_s21 = sand.u32 1, %s1779_s28   ;;  %s1518_s23 = sshll.u32 %s1787_s30, 7 }
  0x1a   : > { %s1515_s22 = sshll.u32 %s359_s19, 2  ;;  %v1294_v13 = vld [vmem:[%s2601_s7] sm:$0xf]  ;;  %s1356_s14 = scalar_lea.sflag [#allocation6], %s354_s21 }
  0x1b   : > { %s365_s25 = scalar_lea.vmem %s2594_s0, %s1515_s22  ;;  %s375_s12 = scalar_lea.vmem %s2595_s1, %s1515_s22 }
  0x1c   : > { %v1479_v3 = vld.sshfl [vmem:[%s365_s25] sm:$0x33 pattern:$0x76325410]  ;;  %388 = vperm.xlu0 %1580, %v385_v2   ;;  %s1474_s22 = sshll.u32 %s354_s21, 3  ;;  %s1801_s30 = smov [#allocation5]  }
  0x1d   : > { %v399_v4 = vcombine.high %v1479_v3, %v1479_v3  ;;  %v1485_v5 = vld.sshfl [vmem:[%s375_s12] sm:$0x33 pattern:$0x76325410]  ;;  %v406_v6 = vsel %vm404_vm0, %v1479_v3, 0  ;;  %v2604_v3 = vlaneseq  ;;  %s356_s24 = scalar_lea.vmem [#allocation5], %s1474_s22  ;;  %s2547_s12 = scalar_lea.hbm %s2602_s8, %s1518_s23 }
  0x1e   : > { %v508_v7 = vcombine.high %v1485_v5, %v1485_v5  ;;  %v518_v10 = vsel %vm404_vm0, %v1485_v5, 0  ;;  %s1372_s25 = sshll.u32 %s356_s24, 4  ;;  %s1721_s19 = sshll.u32 %s1801_s30, 4  ;;  %s2549_s25 = int_to_ptr.vmem [resolvable:$true] %s1372_s25  ;;  %s1722_s19 = int_to_ptr.vmem [resolvable:$false] %s1721_s19 }
  0x1f   : > { %1480 = vmatprep.subr.msk.bf16.mxu1 %vm404_vm0, %v399_v4  ;;  %vm1997_vm4 = vcmp.lt.s32.totalorder %v2604_v3, 256  ;;  %s1717_s16 = scalar_lea.vmem %s2549_s25, 128  ;;  %s1723_s20 = scalar_lea.vmem %s1722_s19, 256 }
  0x20   : > { %412 = vmatpush1.bf16.msra.mxu1 %v406_v6  ;;  %484 = vperm.xlu0 %1580, %v475_v8   ;;  %p1718_p12 = scmp.ne.s32.totalorder %s2549_s25, %s1717_s16  ;;  %p1724_p1 = scmp.lt.s32.totalorder %s2549_s25, %s1722_s19 }
  0x21   : > { %1486 = vmatprep.subr.msk.bf16.mxu1 %vm404_vm0, %v508_v7  ;;  %p1725_p2 = scmp.lt.s32.totalorder %s1723_s20, %s1717_s16 }
  0x22   : > { %p1719_p13 = pnand %p1718_p12, %p1887_p4 }
  0x23   : > { %1481 = vmatmul.mubr.msk.bf16.vlgmr.msra.gmra.mrb[0].mxu1 %vm400_vm1, %v383_v9  ;;  %p1726_p3 = por %p1725_p2, %p1724_p1 }
  0x24   : > { %524 = vmatpush1.bf16.msra.mxu1 %v518_v10  ;;  %555 = vmatprep.mubr.bf16.mxu1 %v2603_v0  ;;  %v1798_v10 = vmov -inf   ;;  %p1720_p0 = pneg %p1719_p13 }
  0x25   : > { %489 = vperm.xlu0 %1580, %v476_v11   ;;  %465 = vst.msk [vmem:[#allocation3] sm:$0x3] %vm1997_vm4, %v1798_v10 }
  0x26   : > { %p1727_p5 = pnand %p1726_p3, %p1720_p0 }
  0x29   : > { %1297 = vperm.xlu0 %1580, %v1294_v13  }
  0x2b   : > { %1487 = vmatmul.mubr.msk.bf16.vlgmr.msra.gmra.mrb[4].mxu1 %vm400_vm1, %v1581_v12 }
  0x2c   : > { %565 = vmatprep.mubr.bf16.mxu1 %v2603_v0 }
  0x33   : > { %1488 = vmatmul.mubr.msk.bf16.gmra.mrb[8].mxu1 %vm400_vm1, %v1582_v14 }
  0x97   : > { %v480_v15 = vpop.permute.xlu0 %479 }
  0x9b   : > { %v389_v16 = vpop.permute.xlu0 %388 }
  0x9f   : > { %v485_v29 = vpop.permute.xlu0 %484 }
  0xa4   : > { %v490_v33 = vpop.permute.xlu0 %489 }
  0xf6   : > { %v445_v17 = vpop.f32.mrb[0].mxu1 }
  0xf7   : > { %v446_v18 = vadd.f32 %v445_v17, %v389_v16  ;;  %v447_v19 = vpop.f32.mrb[1].mxu1 }
  0xf8   : > { %v448_v20 = vadd.f32 %v447_v19, %v389_v16  ;;  %v449_v21 = vpop.f32.mrb[2].mxu1 }
  0xf9   : > { %v1519_v22 = vpack.c.bf16 %v446_v18, %v446_v18  ;;  %v450_v23 = vpop.f32.mrb[3].mxu1 }
  0xfa   : > { %v1520_v24 = vpack.c.bf16 %v448_v20, %v448_v20 }
  0xfb   : > { %v667_v25 = vsel %vm665_vm2, %v1519_v22, 0 }
  0xfc   : > { %1491 = vmatprep.subr.msk.bf16.mxu0 %vm665_vm2, %v1520_v24 }
  0xfd   : > { %673 = vmatpush1.bf16.msra.mxu0 %v667_v25 }
  0xfe   : > { %v557_v26 = vpop.f32.mrb[4].mxu1 }
  0xff   : > { %v559_v27 = vpop.f32.mrb[5].mxu1  ;;  %v558_v28 = vadd.f32 %v557_v26, %v480_v15 }
 0x100   : > { %v561_v30 = vpop.f32.mrb[6].mxu1  ;;  %v560_v44 = vadd.f32 %v559_v27, %v480_v15 }
 0x101   : > { %v563_v31 = vpop.f32.mrb[7].mxu1  ;;  %v574_v32 = vpack.c.bf16 %v558_v28, %v558_v28  ;;  %v1945_v35 = vadd.f32 %v561_v30, %v485_v29 }
 0x102   : > { %v564_v38 = vadd.f32 %v563_v31, %v485_v29  ;;  %v575_v45 = vpack.c.bf16 %v560_v44, %v560_v44 }
 0x103   : > { %579 = vxpose.xlu1.c.b16.start.end [1/1] (short) %v574_v32, 128  ;;  %2663 = vst [vmem:[#allocation8_spill] sm:$0xff] %v1945_v35 }
 0x106   : > { %v567_v34 = vpop.f32.mrb[8].mxu1 }
 0x107   : > { %v1947_v36 = vadd.f32 %v567_v34, %v490_v33  ;;  %v569_v37 = vpop.f32.mrb[9].mxu1 }
 0x108   : > { %v570_v39 = vadd.f32 %v569_v37, %v490_v33  ;;  %v571_v40 = vpop.f32.mrb[10].mxu1 }
 0x109   : > { %2664 = vst [vmem:[#allocation9_spill] sm:$0xff] %v1947_v36  ;;  %v572_v42 = vpop.f32.mrb[11].mxu1 }
 0x10a   : > { %v577_v43 = vpack.c.bf16 %v570_v39, %v564_v38 }
 0x10c   : > { %1248 = vmatprep.mubr.bf16.mxu1 %v577_v43 }
 0x120   : > { %595 = vxpose.xlu1.c.b16.start.end [1/1] (short) %v575_v45, 128 }
 0x169   : > { %v587_v46 = vpop.trf.xlu1 }
 0x16a   : > { %1492 = vmatmul.mubr.msk.bf16.vlgmr.msra.gmra.mrb[0].mxu0 %vm616_vm3, %v587_v46 }
 0x16b   : > { %714 = vmatprep.mubr.bf16.mxu0 %v2603_v0 }
 0x16d   : > { %v588_v47 = vpop.trf.xlu1 }
 0x171   : > { %v589_v48 = vpop.trf.xlu1 }
 0x172   : > { %1493 = vmatmul.mubr.msk.bf16.gmra.mrb[4].mxu0 %vm616_vm3, %v588_v47 }
 0x173   : > { %724 = vmatprep.mubr.bf16.mxu0 %v2603_v0 }
 0x175   : > { %v590_v49 = vpop.trf.xlu1 }
 0x179   : > { %v591_v50 = vpop.trf.xlu1 }
 0x17a   : > { %1494 = vmatmul.mubr.msk.bf16.gmra.mrb[8].mxu0 %vm616_vm3, %v589_v48 }
 0x17b   : > { %734 = vmatprep.mubr.bf16.mxu0 %v2603_v0 }
 0x17d   : > { %v592_v51 = vpop.trf.xlu1 }
 0x181   : > { %v593_v52 = vpop.trf.xlu1 }
 0x182   : > { %1495 = vmatmul.mubr.msk.bf16.gmra.mrb[12].mxu0 %vm616_vm3, %v590_v49 }
 0x183   : > { %744 = vmatprep.mubr.bf16.mxu0 %v2603_v0 }
 0x185   : > { %v594_v53 = vpop.trf.xlu1 }
 0x189   : > { %v603_v54 = vpop.trf.xlu1 }
 0x18a   : > { %1496 = vmatmul.mubr.msk.bf16.gmra.mrb[16].mxu0 %vm616_vm3, %v591_v50 }
 0x18b   : > { %754 = vmatprep.mubr.bf16.mxu0 %v2603_v0 }
 0x18d   : > { %v604_v55 = vpop.trf.xlu1 }
 0x191   : > { %v605_v56 = vpop.trf.xlu1 }
 0x192   : > { %1497 = vmatmul.mubr.msk.bf16.gmra.mrb[20].mxu0 %vm616_vm3, %v592_v51 }
 0x193   : > { %764 = vmatprep.mubr.bf16.mxu0 %v2603_v0 }
 0x195   : > { %v606_v57 = vpop.trf.xlu1 }
 0x199   : > { %v607_v58 = vpop.trf.xlu1 }
 0x19a   : > { %1498 = vmatmul.mubr.msk.bf16.gmra.mrb[24].mxu0 %vm616_vm3, %v593_v52 }
 0x19b   : > { %774 = vmatprep.mubr.bf16.mxu0 %v2603_v0 }
 0x19d   : > { %v608_v59 = vpop.trf.xlu1 }
 0x1a1   : > { %v609_v60 = vpop.trf.xlu1 }
 0x1a2   : > { %1499 = vmatmul.mubr.msk.bf16.gmra.mrb[28].mxu0 %vm616_vm3, %v594_v53 }
 0x1a3   : > { %784 = vmatprep.mubr.bf16.mxu0 %v2603_v0 }
 0x1a5   : > { %v610_v61 = vpop.trf.xlu1 }
 0x1aa   : > { %1500 = vmatmul.mubr.msk.bf16.gmra.mrb[32].mxu0 %vm616_vm3, %v603_v54 }
 0x1ab   : > { %794 = vmatprep.mubr.bf16.mxu0 %v2603_v0 }
 0x1b2   : > { %1501 = vmatmul.mubr.msk.bf16.gmra.mrb[36].mxu0 %vm616_vm3, %v604_v55 }
 0x1b3   : > { %804 = vmatprep.mubr.bf16.mxu0 %v2603_v0 }
 0x1ba   : > { %1502 = vmatmul.mubr.msk.bf16.gmra.mrb[40].mxu0 %vm616_vm3, %v605_v56 }
 0x1bb   : > { %814 = vmatprep.mubr.bf16.mxu0 %v2603_v0 }
 0x1c2   : > { %1503 = vmatmul.mubr.msk.bf16.gmra.mrb[44].mxu0 %vm616_vm3, %v606_v57 }
 0x1c3   : > { %824 = vmatprep.mubr.bf16.mxu0 %v2603_v0 }
 0x1ca   : > { %1504 = vmatmul.mubr.msk.bf16.gmra.mrb[48].mxu0 %vm616_vm3, %v607_v58 }
 0x1cb   : > { %834 = vmatprep.mubr.bf16.mxu0 %v2603_v0 }
 0x1d2   : > { %1505 = vmatmul.mubr.msk.bf16.gmra.mrb[52].mxu0 %vm616_vm3, %v608_v59 }
 0x1d3   : > { %844 = vmatprep.mubr.bf16.mxu0 %v2603_v0 }
 0x1da   : > { %1506 = vmatmul.mubr.msk.bf16.gmra.mrb[56].mxu0 %vm616_vm3, %v609_v60 }
 0x1db   : > { %854 = vmatprep.mubr.bf16.mxu0 %v2603_v0 }
 0x1e2   : > { %1507 = vmatmul.mubr.msk.bf16.gmra.mrb[60].mxu0 %vm616_vm3, %v610_v61 }
 0x23d   : > { %v1982_v62 = vpop.f32.mrb[0].mxu0 }
 0x23e   : > { %v1984_v63 = vpop.f32.mrb[1].mxu0 }
 0x23f   : > { %v1986_v1 = vpop.f32.mrb[2].mxu0 }
 0x240   : > { %v1988_v2 = vpop.f32.mrb[3].mxu0 }
 0x245   : > { %v1990_v4 = vpop.f32.mrb[4].mxu0 }
 0x246   : > { %v866_v5 = vmax.f32 %v1982_v62, %v1990_v4  ;;  %v1994_v6 = vpop.f32.mrb[5].mxu0 }
 0x247   : > { %v903_v8 = vmax.f32 %v1984_v63, %v1994_v6  ;;  %v2003_v9 = vpop.f32.mrb[6].mxu0 }
 0x248   : > { %v867_v11 = vmax.f32 %v1986_v1, %v2003_v9  ;;  %v2009_v12 = vpop.f32.mrb[7].mxu0 }
 0x249   : > { %v904_v13 = vmax.f32 %v1988_v2, %v2009_v12 }
 0x24d   : > { %v2013_v14 = vpop.f32.mrb[8].mxu0 }
 0x24e   : > { %v868_v15 = vmax.f32 %v866_v5, %v2013_v14  ;;  %v2016_v16 = vpop.f32.mrb[9].mxu0 }
 0x24f   : > { %v905_v17 = vmax.f32 %v903_v8, %v2016_v16  ;;  %v2019_v18 = vpop.f32.mrb[10].mxu0 }
 0x250   : > { %v869_v19 = vmax.f32 %v867_v11, %v2019_v18  ;;  %v2022_v20 = vpop.f32.mrb[11].mxu0 }
 0x251   : > { %v906_v21 = vmax.f32 %v904_v13, %v2022_v20 }
 0x255   : > { %v2025_v22 = vpop.f32.mrb[12].mxu0 }
 0x256   : > { %v870_v23 = vmax.f32 %v868_v15, %v2025_v22  ;;  %v2028_v24 = vpop.f32.mrb[13].mxu0 }
 0x257   : > { %v907_v25 = vmax.f32 %v905_v17, %v2028_v24  ;;  %v2031_v26 = vpop.f32.mrb[14].mxu0 }
 0x258   : > { %v871_v27 = vmax.f32 %v869_v19, %v2031_v26  ;;  %v2034_v28 = vpop.f32.mrb[15].mxu0 }
 0x259   : > { %v908_v29 = vmax.f32 %v906_v21, %v2034_v28 }
 0x25d   : > { %v2037_v30 = vpop.f32.mrb[16].mxu0 }
 0x25e   : > { %v872_v31 = vmax.f32 %v870_v23, %v2037_v30  ;;  %v2040_v32 = vpop.f32.mrb[17].mxu0 }
 0x25f   : > { %v909_v33 = vmax.f32 %v907_v25, %v2040_v32  ;;  %v2043_v34 = vpop.f32.mrb[18].mxu0 }
 0x260   : > { %v873_v37 = vmax.f32 %v871_v27, %v2043_v34  ;;  %v2046_v38 = vpop.f32.mrb[19].mxu0 }
 0x261   : > { %v910_v39 = vmax.f32 %v908_v29, %v2046_v38 }
 0x265   : > { %v2049_v40 = vpop.f32.mrb[20].mxu0 }
 0x266   : > { %v874_v42 = vmax.f32 %v872_v31, %v2049_v40  ;;  %v2052_v43 = vpop.f32.mrb[21].mxu0 }
 0x267   : > { %v911_v44 = vmax.f32 %v909_v33, %v2052_v43  ;;  %v2055_v45 = vpop.f32.mrb[22].mxu0 }
 0x268   : > { %v875_v46 = vmax.f32 %v873_v37, %v2055_v45  ;;  %v2058_v47 = vpop.f32.mrb[23].mxu0 }
 0x269   : > { %v912_v48 = vmax.f32 %v910_v39, %v2058_v47 }
 0x26d   : > { %v2061_v49 = vpop.f32.mrb[24].mxu0 }
 0x26e   : > { %v876_v50 = vmax.f32 %v874_v42, %v2061_v49  ;;  %v2064_v51 = vpop.f32.mrb[25].mxu0 }
 0x26f   : > { %v913_v52 = vmax.f32 %v911_v44, %v2064_v51  ;;  %v2067_v53 = vpop.f32.mrb[26].mxu0 }
 0x270   : > { %v877_v54 = vmax.f32 %v875_v46, %v2067_v53  ;;  %v2070_v55 = vpop.f32.mrb[27].mxu0 }
 0x271   : > { %v914_v56 = vmax.f32 %v912_v48, %v2070_v55 }
 0x275   : > { %v2073_v57 = vpop.f32.mrb[28].mxu0 }
 0x276   : > { %v878_v58 = vmax.f32 %v876_v50, %v2073_v57  ;;  %v2076_v59 = vpop.f32.mrb[29].mxu0 }
 0x277   : > { %v915_v60 = vmax.f32 %v913_v52, %v2076_v59  ;;  %v2079_v61 = vpop.f32.mrb[30].mxu0 }
 0x278   : > { %v879_v5 = vmax.f32 %v877_v54, %v2079_v61  ;;  %v2082_v8 = vpop.f32.mrb[31].mxu0 }
 0x279   : > { %v916_v10 = vmax.f32 %v914_v56, %v2082_v8 }
 0x27d   : > { %v2085_v11 = vpop.f32.mrb[32].mxu0 }
 0x27e   : > { %v880_v13 = vmax.f32 %v878_v58, %v2085_v11  ;;  %v2088_v15 = vpop.f32.mrb[33].mxu0 }
 0x27f   : > { %v917_v17 = vmax.f32 %v915_v60, %v2088_v15  ;;  %v2091_v19 = vpop.f32.mrb[34].mxu0 }
 0x280   : > { %v881_v21 = vmax.f32 %v879_v5, %v2091_v19  ;;  %v2094_v23 = vpop.f32.mrb[35].mxu0 }
 0x281   : > { %v918_v25 = vmax.f32 %v916_v10, %v2094_v23 }
 0x285   : > { %v2097_v27 = vpop.f32.mrb[36].mxu0 }
 0x286   : > { %v882_v29 = vmax.f32 %v880_v13, %v2097_v27  ;;  %v2100_v31 = vpop.f32.mrb[37].mxu0 }
 0x287   : > { %v919_v33 = vmax.f32 %v917_v17, %v2100_v31  ;;  %v2103_v37 = vpop.f32.mrb[38].mxu0 }
 0x288   : > { %v883_v39 = vmax.f32 %v881_v21, %v2103_v37  ;;  %v2106_v42 = vpop.f32.mrb[39].mxu0 }
 0x289   : > { %2667 = vst [vmem:[#allocation10_spill] sm:$0xff] %v2106_v42  ;;  %v920_v44 = vmax.f32 %v918_v25, %v2106_v42 }
 0x28d   : > { %v2109_v46 = vpop.f32.mrb[40].mxu0 }
 0x28e   : > { %2668 = vst [vmem:[#allocation11_spill] sm:$0xff] %v2109_v46  ;;  %v884_v48 = vmax.f32 %v882_v29, %v2109_v46  ;;  %v2112_v50 = vpop.f32.mrb[41].mxu0 }
 0x28f   : > { %2669 = vst [vmem:[#allocation12_spill] sm:$0xff] %v2112_v50  ;;  %v921_v52 = vmax.f32 %v919_v33, %v2112_v50  ;;  %v2115_v54 = vpop.f32.mrb[42].mxu0 }
 0x290   : > { %2670 = vst [vmem:[#allocation13_spill] sm:$0xff] %v2115_v54  ;;  %v885_v56 = vmax.f32 %v883_v39, %v2115_v54  ;;  %v2118_v58 = vpop.f32.mrb[43].mxu0 }
 0x291   : > { %2671 = vst [vmem:[#allocation14_spill] sm:$0xff] %v2118_v58  ;;  %v922_v60 = vmax.f32 %v920_v44, %v2118_v58 }
 0x295   : > { %v2121_v5 = vpop.f32.mrb[44].mxu0 }
 0x296   : > { %2672 = vst [vmem:[#allocation15_spill] sm:$0xff] %v2121_v5  ;;  %v886_v10 = vmax.f32 %v884_v48, %v2121_v5  ;;  %v2124_v13 = vpop.f32.mrb[45].mxu0 }
 0x297   : > { %2673 = vst [vmem:[#allocation16_spill] sm:$0xff] %v2124_v13  ;;  %v923_v17 = vmax.f32 %v921_v52, %v2124_v13  ;;  %v2127_v21 = vpop.f32.mrb[46].mxu0 }
 0x298   : > { %2674 = vst [vmem:[#allocation17_spill] sm:$0xff] %v2127_v21  ;;  %v887_v25 = vmax.f32 %v885_v56, %v2127_v21  ;;  %v2130_v29 = vpop.f32.mrb[47].mxu0 }
 0x299   : > { %2675 = vst [vmem:[#allocation18_spill] sm:$0xff] %v2130_v29  ;;  %v924_v33 = vmax.f32 %v922_v60, %v2130_v29  ;;  %v1799_v29 = vmov 0.0  }
 0x29a   : > { %468 = vst [vmem:[#allocation4 + $0x10] sm:$0x1] %v1799_v29  ;;  %469 = vst [vmem:[#allocation4 + $0x18] sm:$0x1] %v1799_v29 }
 0x29d   : > { %v2133_v39 = vpop.f32.mrb[48].mxu0 }
 0x29e   : > { %2676 = vst [vmem:[#allocation19_spill] sm:$0xff] %v2133_v39  ;;  %v888_v44 = vmax.f32 %v886_v10, %v2133_v39  ;;  %v2136_v0 = vpop.f32.mrb[49].mxu0 }
 0x29f   : > { %2677 = vst [vmem:[#allocation20_spill] sm:$0xff] %v2136_v0  ;;  %v925_v48 = vmax.f32 %v923_v17, %v2136_v0  ;;  %v2139_v41 = vpop.f32.mrb[50].mxu0 }
 0x2a0   : > { %2678 = vst [vmem:[#allocation21_spill] sm:$0xff] %v2139_v41  ;;  %v889_v52 = vmax.f32 %v887_v25, %v2139_v41  ;;  %v2142_v3 = vpop.f32.mrb[51].mxu0 }
 0x2a1   : > { %2679 = vst [vmem:[#allocation22_spill] sm:$0xff] %v2142_v3  ;;  %v926_v56 = vmax.f32 %v924_v33, %v2142_v3 }
 0x2a5   : > { %v2145_v35 = vpop.f32.mrb[52].mxu0 }
 0x2a6   : > { %2680 = vst [vmem:[#allocation23_spill] sm:$0xff] %v2145_v35  ;;  %v890_v60 = vmax.f32 %v888_v44, %v2145_v35  ;;  %v2148_v36 = vpop.f32.mrb[53].mxu0 }
 0x2a7   : > { %2681 = vst [vmem:[#allocation24_spill] sm:$0xff] %v2148_v36  ;;  %v927_v10 = vmax.f32 %v925_v48, %v2148_v36  ;;  %v2151_v17 = vpop.f32.mrb[54].mxu0 }
 0x2a8   : > { %2682 = vst [vmem:[#allocation25_spill] sm:$0xff] %v2151_v17  ;;  %v891_v0 = vmax.f32 %v889_v52, %v2151_v17  ;;  %v2154_v25 = vpop.f32.mrb[55].mxu0 }
 0x2a9   : > { %2683 = vst [vmem:[#allocation26_spill] sm:$0xff] %v2154_v25  ;;  %v928_v41 = vmax.f32 %v926_v56, %v2154_v25 }
 0x2ad   : > { %v2157_v33 = vpop.f32.mrb[56].mxu0 }
 0x2ae   : > { %2684 = vst [vmem:[#allocation27_spill] sm:$0xff] %v2157_v33  ;;  %v892_v3 = vmax.f32 %v890_v60, %v2157_v33  ;;  %v2160_v44 = vpop.f32.mrb[57].mxu0 }
 0x2af   : > { %2685 = vst [vmem:[#allocation28_spill] sm:$0xff] %v2160_v44  ;;  %v929_v35 = vmax.f32 %v927_v10, %v2160_v44  ;;  %v2163_v39 = vpop.f32.mrb[58].mxu0 }
 0x2b0   : > { %2686 = vst [vmem:[#allocation29_spill] sm:$0xff] %v2163_v39  ;;  %v893_v29 = vmax.f32 %v891_v0, %v2163_v39  ;;  %v2166_v48 = vpop.f32.mrb[59].mxu0 }
 0x2b1   : > { %2687 = vst [vmem:[#allocation30_spill] sm:$0xff] %v2166_v48  ;;  %v930_v52 = vmax.f32 %v928_v41, %v2166_v48  ;;  %v1800_v48 = vmov 1966171168  }
 0x2b2   : > { %v944_v58 = vunpack.c.l.s4 %v1800_v48 }
 0x2b4   : > { %v945_v46 = vunpack.c.0.s8 %v944_v58 }
 0x2b5   : > { %v2169_v17 = vpop.f32.mrb[60].mxu0 }
 0x2b6   : > { %2688 = vst [vmem:[#allocation31_spill] sm:$0xff] %v2169_v17  ;;  %v894_v56 = vmax.f32 %v892_v3, %v2169_v17  ;;  %v2172_v25 = vpop.f32.mrb[61].mxu0 }
 0x2b7   : > { %2689 = vst [vmem:[#allocation32_spill] sm:$0xff] %v2172_v25  ;;  %v931_v60 = vmax.f32 %v929_v35, %v2172_v25  ;;  %v2175_v33 = vpop.f32.mrb[62].mxu0  ;;  %v2691_v35 = vlaneseq }
 0x2b8   : > { %2690 = vst [vmem:[#allocation33_spill] sm:$0xff] %v2175_v33  ;;  %v895_v10 = vmax.f32 %v893_v29, %v2175_v33  ;;  %v862_v44 = vpop.f32.mrb[63].mxu0 }
 0x2b9   : > { %v932_v36 = vmax.f32 %v930_v52, %v862_v44  ;;  %v2179_v25 = vshrl.u32 %v2691_v35, 7 }
 0x2ba   : > { %v896_v21 = vmax.f32 %v894_v56, %v895_v10 }
 0x2bb   : > { %v933_v0 = vmax.f32 %v931_v60, %v932_v36  ;;  %2692 = vst [vmem:[#allocation34_spill] sm:$0xff] %v2179_v25  ;;  %v948_v36 = vsub.s32 %v945_v46, %v2179_v25  ;;  %v2701_v46 = vld [vmem:[#allocation15_spill] sm:$0xff] }
 0x2bc   : > { %v897_v39 = vrot.slane %v896_v21, 4 }
 0x2bd   : > { %v934_v13 = vrot.slane %v933_v0, 4 }
 0x2be   : > { %v898_v5 = vmax.f32 %v896_v21, %v897_v39  ;;  %v2182_v21 = vld [vmem:[#allocation3] sm:$0x3]  ;;  %v2185_v39 = vsub.s32 0, %v2179_v25  ;;  %v2718_v35 = vld [vmem:[#allocation32_spill] sm:$0xff] }
 0x2bf   : > { %v935_v41 = vmax.f32 %v933_v0, %v934_v13  ;;  %2693 = vst [vmem:[#allocation35_spill] sm:$0xff] %v2182_v21 }
 0x2c0   : > { %v899_v54 = vrot.slane %v898_v5, 2  ;;  %2694 = vst [vmem:[#allocation36_spill] sm:$0xff] %v2185_v39 }
 0x2c1   : > { %v936_v3 = vrot.slane %v935_v41, 2 }
 0x2c2   : > { %v900_v17 = vmax.f32 %v898_v5, %v899_v54  ;;  %v2655_v54 = vsub.s32 1, %v2179_v25  ;;  %v2714_v25 = vld [vmem:[#allocation28_spill] sm:$0xff] }
 0x2c3   : > { %v937_v50 = vmax.f32 %v935_v41, %v936_v3 }
 0x2c4   : > { %v901_v42 = vrot.slane %v900_v17, 1 }
 0x2c5   : > { %v938_v29 = vrot.slane %v937_v50, 1 }
 0x2c6   : > { %v902_v33 = vmax.f32 %v900_v17, %v901_v42 }
 0x2c7   : > { %v939_v52 = vmax.f32 %v937_v50, %v938_v29  ;;  %v2702_v29 = vld [vmem:[#allocation16_spill] sm:$0xff] }
 0x2c9   : > { %v942_v56 = vcombine.low %v902_v33, %v939_v52  ;;  %v2696_v52 = vld [vmem:[#allocation10_spill] sm:$0xff] }
 0x2cb   : > { %v949_v60 = vrot.slane %v942_v56, %v948_v36  ;;  %v2703_v56 = vld [vmem:[#allocation17_spill] sm:$0xff] }
 0x2cd   : > { %v956_v13 = vrot.slane %v949_v60, %v948_v36  ;;  %v2697_v36 = vld [vmem:[#allocation11_spill] sm:$0xff] }
 0x2cf   : > { %v2189_v58 = vmax.f32 %v2182_v21, %v956_v13  ;;  %v2699_v13 = vld [vmem:[#allocation13_spill] sm:$0xff]  ;;  %v2717_v21 = vld [vmem:[#allocation31_spill] sm:$0xff] }
 0x2d1   : > { %2695 = vst [vmem:[#allocation37_spill] sm:$0xff] %v2189_v58  ;;  %v2193_v5 = vrot.slane %v2189_v58, %v2185_v39  ;;  %v2198_v42 = vrot.slane %v2189_v58, %v2655_v54  ;;  %1271 = vst.msk [vmem:[#allocation3] sm:$0x3] %vm1997_vm4, %v2189_v58  ;;  %v2700_v54 = vld [vmem:[#allocation14_spill] sm:$0xff]  ;;  %v2715_v39 = vld [vmem:[#allocation29_spill] sm:$0xff] }
 0x2d3   : > { %v1036_v50 = vsub.f32 %v862_v44, %v2198_v42  ;;  %v2720_v41 = vsub.f32 %v1982_v62, %v2193_v5  ;;  %v2721_v44 = vsub.f32 %v1984_v63, %v2198_v42  ;;  %v2722_v7 = vsub.f32 %v1986_v1, %v2193_v5 }
 0x2d4   : > { %v2723_v10 = vsub.f32 %v1988_v2, %v2198_v42  ;;  %v2724_v33 = vsub.f32 %v1990_v4, %v2193_v5  ;;  %v2725_v62 = vsub.f32 %v1994_v6, %v2198_v42  ;;  %v2727_v2 = vsub.f32 %v2009_v12, %v2198_v42 }
 0x2d5   : > { %v1163_v60 = vmul.f32 1.442695, %v1036_v50  ;;  %v2698_v50 = vld [vmem:[#allocation12_spill] sm:$0xff]  ;;  %v1037_v17 = vmul.f32 1.442695, %v2720_v41  ;;  %v2728_v4 = vsub.f32 %v2013_v14, %v2193_v5  ;;  %v2729_v6 = vsub.f32 %v2016_v16, %v2198_v42 }
 0x2d6   : > { %v1039_v0 = vmul.f32 1.442695, %v2721_v44  ;;  %v1041_v58 = vmul.f32 1.442695, %v2722_v7  ;;  %v1043_v48 = vmul.f32 1.442695, %v2723_v10  ;;  %v2726_v44 = vsub.f32 %v2003_v9, %v2193_v5 }
 0x2d7   : > { %1583 = vpow2.f32 %v1163_v60  ;;  %v1045_v3 = vmul.f32 1.442695, %v2724_v33  ;;  %v1047_v63 = vmul.f32 1.442695, %v2725_v62  ;;  %v1051_v10 = vmul.f32 1.442695, %v2727_v2 }
 0x2d8   : > { %1585 = vpow2.f32 %v1037_v17  ;;  %v1049_v1 = vmul.f32 1.442695, %v2726_v44  ;;  %v1053_v17 = vmul.f32 1.442695, %v2728_v4  ;;  %v1055_v33 = vmul.f32 1.442695, %v2729_v6 }
 0x2d9   : > { %1587 = vpow2.f32 %v1039_v0  ;;  %v2730_v9 = vsub.f32 %v2019_v18, %v2193_v5  ;;  %v2731_v12 = vsub.f32 %v2022_v20, %v2198_v42  ;;  %v2732_v14 = vsub.f32 %v2025_v22, %v2193_v5 }
 0x2da   : > { %1589 = vpow2.f32 %v1041_v58  ;;  %v2733_v16 = vsub.f32 %v2028_v24, %v2198_v42  ;;  %v2734_v18 = vsub.f32 %v2031_v26, %v2193_v5  ;;  %v2735_v62 = vsub.f32 %v2034_v28, %v2198_v42 }
 0x2db   : > { %1591 = vpow2.f32 %v1043_v48  ;;  %v1057_v58 = vmul.f32 1.442695, %v2730_v9  ;;  %v1059_v48 = vmul.f32 1.442695, %v2731_v12  ;;  %v1061_v7 = vmul.f32 1.442695, %v2732_v14 }
 0x2dc   : > { %1593 = vpow2.f32 %v1045_v3  ;;  %v1063_v41 = vmul.f32 1.442695, %v2733_v16  ;;  %v1065_v60 = vmul.f32 1.442695, %v2734_v18  ;;  %v1067_v22 = vmul.f32 1.442695, %v2735_v62 }
 0x2dd   : > { %1595 = vpow2.f32 %v1047_v63  ;;  %v2736_v44 = vsub.f32 %v2037_v30, %v2193_v5  ;;  %v2737_v2 = vsub.f32 %v2040_v32, %v2198_v42  ;;  %v2738_v4 = vsub.f32 %v2043_v34, %v2193_v5 }
 0x2de   : > { %1597 = vpow2.f32 %v1049_v1  ;;  %v2739_v6 = vsub.f32 %v2046_v38, %v2198_v42  ;;  %v2740_v9 = vsub.f32 %v2049_v40, %v2193_v5  ;;  %v2741_v12 = vsub.f32 %v2052_v43, %v2198_v42 }
 0x2df   : > { %1599 = vpow2.f32 %v1051_v10  ;;  %v1069_v1 = vmul.f32 1.442695, %v2736_v44  ;;  %v1071_v10 = vmul.f32 1.442695, %v2737_v2  ;;  %v2742_v14 = vsub.f32 %v2055_v45, %v2193_v5 }
 0x2e0   : > { %1601 = vpow2.f32 %v1053_v17  ;;  %v1073_v17 = vmul.f32 1.442695, %v2738_v4  ;;  %v2743_v16 = vsub.f32 %v2058_v47, %v2198_v42  ;;  %v2744_v43 = vsub.f32 %v2061_v49, %v2193_v5 }
 0x2e1   : > { %v2371_v0 = vpop.eup %1583  ;;  %1603 = vpow2.f32 %v1055_v33  ;;  %v1075_v33 = vmul.f32 1.442695, %v2739_v6  ;;  %v2745_v45 = vsub.f32 %v2064_v51, %v2198_v42  ;;  %v2748_v51 = vsub.f32 %v2073_v57, %v2193_v5 }
 0x2e2   : > { %v1586_v3 = vpop.eup %1585  ;;  %1605 = vpow2.f32 %v1057_v58  ;;  %v1077_v58 = vmul.f32 1.442695, %v2740_v9  ;;  %v1085_v62 = vmul.f32 1.442695, %v2744_v43  ;;  %v2751_v57 = vsub.f32 %v2082_v8, %v2198_v42 }
 0x2e3   : > { %v1588_v20 = vpop.eup %1587  ;;  %1607 = vpow2.f32 %v1059_v48  ;;  %v1079_v48 = vmul.f32 1.442695, %v2741_v12  ;;  %v1087_v2 = vmul.f32 1.442695, %v2745_v45  ;;  %v2754_v8 = vsub.f32 %v2091_v19, %v2193_v5 }
 0x2e4   : > { %v1590_v63 = vpop.eup %1589  ;;  %1609 = vpow2.f32 %v1061_v7  ;;  %v1081_v7 = vmul.f32 1.442695, %v2742_v14  ;;  %v1099_v12 = vmul.f32 1.442695, %v2751_v57  ;;  %v2757_v19 = vsub.f32 %v2100_v31, %v2198_v42 }
 0x2e5   : > { %v1592_v24 = vpop.eup %1591  ;;  %1611 = vpow2.f32 %v1063_v41  ;;  %v1083_v41 = vmul.f32 1.442695, %v2743_v16  ;;  %v1165_v18 = vpack.c.bf16 %v1590_v63, %v1586_v3  ;;  %v2746_v3 = vsub.f32 %v2067_v53, %v2193_v5 }
 0x2e6   : > { %v1594_v26 = vpop.eup %1593  ;;  %1613 = vpow2.f32 %v1065_v60  ;;  %v1166_v40 = vpack.c.bf16 %v1592_v24, %v1588_v20  ;;  %v2747_v24 = vsub.f32 %v2070_v55, %v2198_v42  ;;  %v2749_v53 = vsub.f32 %v2076_v59, %v2198_v42 }
 0x2e7   : > { %v1596_v28 = vpop.eup %1595  ;;  %1615 = vpow2.f32 %v1067_v22  ;;  %v1089_v20 = vmul.f32 1.442695, %v2746_v3  ;;  %v2750_v55 = vsub.f32 %v2079_v61, %v2193_v5  ;;  %v2752_v59 = vsub.f32 %v2085_v11, %v2193_v5 }
 0x2e8   : > { %v1598_v30 = vpop.eup %1597  ;;  %1617 = vpow2.f32 %v1069_v1  ;;  %1216 = vmatprep.subr.bf16.mxu1 %v1166_v40  ;;  %v1095_v6 = vmul.f32 1.442695, %v2749_v53  ;;  %v2753_v61 = vsub.f32 %v2088_v15, %v2198_v42  ;;  %v2755_v11 = vsub.f32 %v2094_v23, %v2198_v42 }
 0x2e9   : > { %v1600_v32 = vpop.eup %1599  ;;  %1619 = vpow2.f32 %v1071_v10  ;;  %v1167_v44 = vpack.c.bf16 %v1598_v30, %v1594_v26  ;;  %1217 = vmatpush1.bf16.msra.mxu1 %v1165_v18  ;;  %v1091_v26 = vmul.f32 1.442695, %v2747_v24  ;;  %v1097_v9 = vmul.f32 1.442695, %v2750_v55 }
 0x2ea   : > { %v1602_v34 = vpop.eup %1601  ;;  %1621 = vpow2.f32 %v1073_v17  ;;  %v1168_v22 = vpack.c.bf16 %v1600_v32, %v1596_v28  ;;  %v1093_v17 = vmul.f32 1.442695, %v2748_v51  ;;  %v2756_v15 = vsub.f32 %v2097_v27, %v2193_v5 }
 0x2eb   : > { %v1604_v38 = vpop.eup %1603  ;;  %1623 = vpow2.f32 %v1075_v33  ;;  %v2758_v23 = vsub.f32 %v2103_v37, %v2193_v5  ;;  %v2759_v27 = vsub.f32 %v2696_v52, %v2198_v42  ;;  %v2760_v31 = vsub.f32 %v2697_v36, %v2193_v5 }
 0x2ec   : > { %v1606_v60 = vpop.eup %1605  ;;  %1625 = vpow2.f32 %v1077_v58  ;;  %1218 = vmatprep.subr.bf16.mxu1 %v1168_v22  ;;  %v2761_v37 = vsub.f32 %v2698_v50, %v2198_v42  ;;  %v2762_v52 = vsub.f32 %v2699_v13, %v2193_v5  ;;  %v2763_v36 = vsub.f32 %v2700_v54, %v2198_v42 }
 0x2ed   : > { %v1608_v1 = vpop.eup %1607  ;;  %1627 = vpow2.f32 %v1079_v48  ;;  %v1169_v10 = vpack.c.bf16 %v1606_v60, %v1602_v34  ;;  %1219 = vmatpush1.bf16.msra.mxu1 %v1167_v44  ;;  %v1101_v34 = vmul.f32 1.442695, %v2752_v59  ;;  %v1107_v60 = vmul.f32 1.442695, %v2755_v11 }
 0x2ee   : > { %v1610_v47 = vpop.eup %1609  ;;  %1629 = vpow2.f32 %v1081_v7  ;;  %v1170_v63 = vpack.c.bf16 %v1608_v1, %v1604_v38  ;;  %v1103_v7 = vmul.f32 1.442695, %v2753_v61  ;;  %v1111_v44 = vmul.f32 1.442695, %v2757_v19 }
 0x2ef   : > { %v1612_v49 = vpop.eup %1611  ;;  %1631 = vpow2.f32 %v1083_v41  ;;  %v1105_v41 = vmul.f32 1.442695, %v2754_v8  ;;  %v1115_v3 = vmul.f32 1.442695, %v2759_v27  ;;  %v1119_v24 = vmul.f32 1.442695, %v2761_v37 }
 0x2f0   : > { %v1614_v4 = vpop.eup %1613  ;;  %1633 = vpow2.f32 %v1085_v62  ;;  %1220 = vmatprep.subr.bf16.mxu1 %v1170_v63  ;;  %v1109_v62 = vmul.f32 1.442695, %v2756_v15  ;;  %v1117_v63 = vmul.f32 1.442695, %v2760_v31  ;;  %v1121_v51 = vmul.f32 1.442695, %v2762_v52 }
 0x2f1   : > { %v1616_v28 = vpop.eup %1615  ;;  %1635 = vpow2.f32 %v1087_v2  ;;  %v1171_v33 = vpack.c.bf16 %v1614_v4, %v1610_v47  ;;  %1221 = vmatpush1.bf16.msra.mxu1 %v1169_v10  ;;  %v1113_v2 = vmul.f32 1.442695, %v2758_v23  ;;  %v1123_v53 = vmul.f32 1.442695, %v2763_v36  ;;  %v2775_v15 = vld [vmem:[#allocation22_spill] sm:$0xff] }
 0x2f2   : > { %v1618_v30 = vpop.eup %1617  ;;  %1637 = vpow2.f32 %v1089_v20  ;;  %v1172_v58 = vpack.c.bf16 %v1616_v28, %v1612_v49  ;;  %v2764_v50 = vsub.f32 %v2701_v46, %v2193_v5  ;;  %v2765_v13 = vsub.f32 %v2702_v29, %v2198_v42  ;;  %v2769_v29 = vld [vmem:[#allocation19_spill] sm:$0xff] }
 0x2f3   : > { %v1620_v32 = vpop.eup %1619  ;;  %1639 = vpow2.f32 %v1091_v26  ;;  %v2766_v54 = vsub.f32 %v2703_v56, %v2193_v5 }
 0x2f4   : > { %v1622_v48 = vpop.eup %1621  ;;  %1641 = vpow2.f32 %v1093_v17  ;;  %1222 = vmatprep.subr.bf16.mxu1 %v1172_v58  ;;  %v1127_v55 = vmul.f32 1.442695, %v2765_v13 }
 0x2f5   : > { %v1624_v14 = vpop.eup %1623  ;;  %1643 = vpow2.f32 %v1095_v6  ;;  %v1173_v38 = vpack.c.bf16 %v1622_v48, %v1618_v30  ;;  %1223 = vmatpush1.bf16.msra.mxu1 %v1171_v33  ;;  %v1125_v33 = vmul.f32 1.442695, %v2764_v50  ;;  %v2767_v48 = vld [vmem:[#allocation18_spill] sm:$0xff] }
 0x2f6   : > { %v1626_v16 = vpop.eup %1625  ;;  %1645 = vpow2.f32 %v1097_v9  ;;  %v1174_v40 = vpack.c.bf16 %v1624_v14, %v1620_v32  ;;  %v1129_v32 = vmul.f32 1.442695, %v2766_v54  ;;  %v2768_v46 = vsub.f32 %v2767_v48, %v2198_v42 }
 0x2f7   : > { %v1628_v18 = vpop.eup %1627  ;;  %1647 = vpow2.f32 %v1099_v12  ;;  %v2770_v14 = vsub.f32 %v2769_v29, %v2193_v5  ;;  %v2793_v29 = vld [vmem:[#allocation33_spill] sm:$0xff] }
 0x2f8   : > { %v1630_v43 = vpop.eup %1629  ;;  %1649 = vpow2.f32 %v1101_v34  ;;  %1224 = vmatprep.subr.bf16.mxu1 %v1174_v40  ;;  %v1131_v59 = vmul.f32 1.442695, %v2768_v46  ;;  %v2773_v40 = vld [vmem:[#allocation21_spill] sm:$0xff] }
 0x2f9   : > { %v1632_v22 = vpop.eup %1631  ;;  %1651 = vpow2.f32 %v1103_v7  ;;  %v1175_v1 = vpack.c.bf16 %v1630_v43, %v1626_v16  ;;  %1225 = vmatpush1.bf16.msra.mxu1 %v1173_v38  ;;  %v1133_v61 = vmul.f32 1.442695, %v2770_v14  ;;  %v2771_v38 = vld [vmem:[#allocation20_spill] sm:$0xff]  ;;  %v2794_v14 = vsub.f32 %v2793_v29, %v2193_v5 }
 0x2fa   : > { %v1634_v45 = vpop.eup %1633  ;;  %1653 = vpow2.f32 %v1105_v41  ;;  %v1176_v10 = vpack.c.bf16 %v1632_v22, %v1628_v18  ;;  %v2772_v56 = vsub.f32 %v2771_v38, %v2198_v42  ;;  %v2774_v18 = vsub.f32 %v2773_v40, %v2193_v5 }
 0x2fb   : > { %v1636_v47 = vpop.eup %1635  ;;  %1655 = vpow2.f32 %v1107_v60 }
 0x2fc   : > { %v1638_v20 = vpop.eup %1637  ;;  %1657 = vpow2.f32 %v1109_v62  ;;  %1226 = vmatprep.subr.bf16.mxu1 %v1176_v10  ;;  %v1135_v16 = vmul.f32 1.442695, %v2772_v56  ;;  %v1137_v11 = vmul.f32 1.442695, %v2774_v18  ;;  %v2776_v62 = vsub.f32 %v2775_v15, %v2198_v42 }
 0x2fd   : > { %v1640_v49 = vpop.eup %1639  ;;  %1659 = vpow2.f32 %v1111_v44  ;;  %v1177_v26 = vpack.c.bf16 %v1638_v20, %v1634_v45  ;;  %1227 = vmatpush1.bf16.msra.mxu1 %v1175_v1  ;;  %v2777_v44 = vld [vmem:[#allocation23_spill] sm:$0xff]  ;;  %v2781_v20 = vld [vmem:[#allocation25_spill] sm:$0xff] }
 0x2fe   : > { %v1642_v4 = vpop.eup %1641  ;;  %1661 = vpow2.f32 %v1113_v2  ;;  %v1178_v17 = vpack.c.bf16 %v1640_v49, %v1636_v47  ;;  %v1139_v22 = vmul.f32 1.442695, %v2776_v62  ;;  %v2778_v1 = vsub.f32 %v2777_v44, %v2193_v5  ;;  %v2779_v2 = vld [vmem:[#allocation24_spill] sm:$0xff] }
 0x2ff   : > { %v1644_v28 = vpop.eup %1643  ;;  %1663 = vpow2.f32 %v1115_v3  ;;  %v2780_v10 = vsub.f32 %v2779_v2, %v2198_v42  ;;  %v2782_v31 = vsub.f32 %v2781_v20, %v2193_v5  ;;  %v2795_v2 = vld [vmem:[#allocation9_spill] sm:$0xff] }
 0x300   : > { %v1646_v6 = vpop.eup %1645  ;;  %1665 = vpow2.f32 %v1117_v63  ;;  %1228 = vmatprep.subr.bf16.mxu1 %v1178_v17  ;;  %v1141_v45 = vmul.f32 1.442695, %v2778_v1  ;;  %v2800_v20 = vld [vmem:[#allocation37_spill] sm:$0xff] }
 0x301   : > { %v1648_v30 = vpop.eup %1647  ;;  %1667 = vpow2.f32 %v1119_v24  ;;  %v1179_v9 = vpack.c.bf16 %v1646_v6, %v1642_v4  ;;  %1229 = vmatpush1.bf16.msra.mxu1 %v1177_v26  ;;  %v1143_v47 = vmul.f32 1.442695, %v2780_v10  ;;  %v1145_v63 = vmul.f32 1.442695, %v2782_v31  ;;  %v2783_v24 = vld [vmem:[#allocation26_spill] sm:$0xff]  ;;  %v2796_v10 = vld [vmem:[#allocation8_spill] sm:$0xff] }
 0x302   : > { %v1650_v58 = vpop.eup %1649  ;;  %1669 = vpow2.f32 %v1121_v51  ;;  %v1180_v57 = vpack.c.bf16 %v1648_v30, %v1644_v28  ;;  %v2784_v26 = vsub.f32 %v2783_v24, %v2198_v42  ;;  %v2785_v51 = vld [vmem:[#allocation27_spill] sm:$0xff]  ;;  %v2788_v30 = vsub.f32 %v2715_v39, %v2193_v5  ;;  %v2803_v24 = vld [vmem:[#allocation34_spill] sm:$0xff] }
 0x303   : > { %v1652_v12 = vpop.eup %1651  ;;  %1671 = vpow2.f32 %v1123_v53  ;;  %v2786_v17 = vsub.f32 %v2785_v51, %v2193_v5  ;;  %v2787_v53 = vsub.f32 %v2714_v25, %v2198_v42  ;;  %v2791_v25 = vsub.f32 %v2717_v21, %v2193_v5 }
 0x304   : > { %v1654_v34 = vpop.eup %1653  ;;  %1673 = vpow2.f32 %v1125_v33  ;;  %1230 = vmatprep.subr.bf16.mxu1 %v1180_v57  ;;  %v1147_v4 = vmul.f32 1.442695, %v2784_v26  ;;  %v1153_v13 = vmul.f32 1.442695, %v2788_v30  ;;  %v2792_v39 = vsub.f32 %v2718_v35, %v2198_v42 }
 0x305   : > { %v1656_v7 = vpop.eup %1655  ;;  %1675 = vpow2.f32 %v1127_v55  ;;  %v1181_v8 = vpack.c.bf16 %v1654_v34, %v1650_v58  ;;  %1231 = vmatpush1.bf16.msra.mxu1 %v1179_v9  ;;  %v1149_v28 = vmul.f32 1.442695, %v2786_v17  ;;  %v1151_v6 = vmul.f32 1.442695, %v2787_v53  ;;  %v2789_v58 = vld [vmem:[#allocation30_spill] sm:$0xff] }
 0x306   : > { %v1658_v41 = vpop.eup %1657  ;;  %1677 = vpow2.f32 %v1129_v32  ;;  %v1182_v60 = vpack.c.bf16 %v1656_v7, %v1652_v12  ;;  %v2790_v54 = vsub.f32 %v2789_v58, %v2198_v42  ;;  %v1157_v12 = vmul.f32 1.442695, %v2791_v25  ;;  %v1200_v17 = vld [vmem:[#allocation4 + $0x18] sm:$0x1] }
 0x307   : > { %v1660_v43 = vpop.eup %1659  ;;  %1679 = vpow2.f32 %v1131_v59  ;;  %v1159_v46 = vmul.f32 1.442695, %v2792_v39  ;;  %v2804_v26 = vsub.s32 1, %v2803_v24 }
 0x308   : > { %v1662_v19 = vpop.eup %1661  ;;  %1681 = vpow2.f32 %v1133_v61  ;;  %1232 = vmatprep.subr.bf16.mxu1 %v1182_v60  ;;  %v1155_v32 = vmul.f32 1.442695, %v2790_v54  ;;  %v1161_v61 = vmul.f32 1.442695, %v2794_v14  ;;  %v1293_v14 = vld [vmem:[%s2600_s6] sm:$0x3] }
 0x309   : > { %v1664_v23 = vpop.eup %1663  ;;  %1683 = vpow2.f32 %v1135_v16  ;;  %v1183_v27 = vpack.c.bf16 %v1662_v19, %v1658_v41  ;;  %1233 = vmatpush1.bf16.msra.mxu1 %v1181_v8 }
 0x30a   : > { %v1666_v3 = vpop.eup %1665  ;;  %1685 = vpow2.f32 %v1137_v11  ;;  %v1184_v49 = vpack.c.bf16 %v1664_v23, %v1660_v43 }
 0x30b   : > { %v1668_v37 = vpop.eup %1667  ;;  %1687 = vpow2.f32 %v1139_v22 }
 0x30c   : > { %v1670_v52 = vpop.eup %1669  ;;  %1689 = vpow2.f32 %v1141_v45  ;;  %1234 = vmatprep.subr.bf16.mxu1 %v1184_v49 }
 0x30d   : > { %v1672_v36 = vpop.eup %1671  ;;  %1691 = vpow2.f32 %v1143_v47  ;;  %v1185_v50 = vpack.c.bf16 %v1670_v52, %v1666_v3  ;;  %1235 = vmatpush1.bf16.msra.mxu1 %v1183_v27  ;;  %v2797_v47 = vpack.c.bf16 %v2795_v2, %v2796_v10  ;;  %v2798_v27 = vmov 0   ;;  %v2799_v3 = vld [vmem:[#allocation35_spill] sm:$0xff]  ;;  %v1199_v52 = vld [vmem:[#allocation4 + $0x10] sm:$0x1] }
 0x30e   : > { %v1674_v33 = vpop.eup %1673  ;;  %1693 = vpow2.f32 %v1145_v63  ;;  %v1186_v55 = vpack.c.bf16 %v1672_v36, %v1668_v37  ;;  %v2801_v31 = vsub.f32 %v2799_v3, %v2800_v20  ;;  %v2802_v37 = vld [vmem:[#allocation36_spill] sm:$0xff] }
 0x30f   : > { %v1676_v9 = vpop.eup %1675  ;;  %1695 = vpow2.f32 %v1147_v4 }
 0x310   : > { %v1678_v57 = vpop.eup %1677  ;;  %1697 = vpow2.f32 %v1149_v28  ;;  %1236 = vmatprep.subr.bf16.mxu1 %v1186_v55  ;;  %v960_v63 = vmul.f32 1.442695, %v2801_v31 }
 0x311   : > { %v1680_v48 = vpop.eup %1679  ;;  %1699 = vpow2.f32 %v1151_v6  ;;  %v1187_v59 = vpack.c.bf16 %v1678_v57, %v1674_v33  ;;  %1237 = vmatpush1.bf16.msra.mxu1 %v1185_v50 }
 0x312   : > { %v1682_v34 = vpop.eup %1681  ;;  %1701 = vpow2.f32 %v1153_v13  ;;  %v1188_v7 = vpack.c.bf16 %v1680_v48, %v1676_v9 }
 0x313   : > { %v1684_v38 = vpop.eup %1683  ;;  %1703 = vpow2.f32 %v1155_v32 }
 0x314   : > { %v1686_v21 = vpop.eup %1685  ;;  %1705 = vpow2.f32 %v1157_v12  ;;  %1238 = vmatprep.subr.bf16.mxu1 %v1188_v7 }
 0x315   : > { %v1688_v56 = vpop.eup %1687  ;;  %1707 = vpow2.f32 %v1159_v46  ;;  %v1189_v16 = vpack.c.bf16 %v1686_v21, %v1682_v34  ;;  %1239 = vmatpush1.bf16.msra.mxu1 %v1187_v59 }
 0x316   : > { %v1690_v8 = vpop.eup %1689  ;;  %1709 = vpow2.f32 %v1161_v61  ;;  %v1190_v42 = vpack.c.bf16 %v1688_v56, %v1684_v38  ;;  %v1298_v61 = vpop.permute.xlu0 %1297 }
 0x317   : > { %v1692_v35 = vpop.eup %1691  ;;  %1711 = vpow2.f32 %v960_v63 }
 0x318   : > { %v1694_v41 = vpop.eup %1693  ;;  %1240 = vmatprep.subr.bf16.mxu1 %v1190_v42 }
 0x319   : > { %v1696_v40 = vpop.eup %1695  ;;  %v1191_v5 = vpack.c.bf16 %v1694_v41, %v1690_v8  ;;  %1241 = vmatpush1.bf16.msra.mxu1 %v1189_v16 }
 0x31a   : > { %v1698_v18 = vpop.eup %1697  ;;  %v1192_v11 = vpack.c.bf16 %v1696_v40, %v1692_v35 }
 0x31b   : > { %v1700_v60 = vpop.eup %1699 }
 0x31c   : > { %v1702_v43 = vpop.eup %1701  ;;  %1242 = vmatprep.subr.bf16.mxu1 %v1192_v11 }
 0x31d   : > { %v1704_v15 = vpop.eup %1703  ;;  %v1193_v62 = vpack.c.bf16 %v1702_v43, %v1698_v18  ;;  %1243 = vmatpush1.bf16.msra.mxu1 %v1191_v5 }
 0x31e   : > { %v1706_v22 = vpop.eup %1705  ;;  %v1194_v19 = vpack.c.bf16 %v1704_v15, %v1700_v60 }
 0x31f   : > { %v1708_v44 = vpop.eup %1707 }
 0x320   : > { %v1710_v1 = vpop.eup %1709  ;;  %v1196_v45 = vpack.c.bf16 %v2371_v0, %v1708_v44  ;;  %1244 = vmatprep.subr.bf16.mxu1 %v1194_v19 }
 0x321   : > { %v1195_v23 = vpack.c.bf16 %v1710_v1, %v1706_v22  ;;  %1245 = vmatpush1.bf16.msra.mxu1 %v1193_v62  ;;  %v1712_v49 = vpop.eup %1711 }
 0x322   : > { %1246 = vmatprep.subr.bf16.mxu1 %v1196_v45  ;;  %v1205_v0 = vrot.slane %v1712_v49, %v2802_v37  ;;  %v1209_v4 = vrot.slane %v1712_v49, %v2804_v26 }
 0x324   : > { %v1212_v51 = vmul.f32 0.0, %v1205_v0  ;;  %v1213_v36 = vmul.f32 0.0, %v1209_v4  ;;  %v1214_v50 = vmul.f32 %v1205_v0, %v1199_v52  ;;  %v1215_v13 = vmul.f32 %v1209_v4, %v1200_v17 }
 0x325   : > { %1247 = vmatpush1.bf16.msra.mxu1 %v1195_v23 }
 0x328   : > { %1249 = vmatmul.mubr.bf16.vlgmr.msra.gmra.mrb[12].mxu1 %v2797_v47 }
 0x329   : > { %1341 = vmatprep.mubr.bf16.mxu1 %v2798_v27 }
 0x3fb   : > { %v1250_v28 = vpop.f32.mrb[12].mxu1 }
 0x3fc   : > { %v1259_v53 = vadd.f32 %v1250_v28, %v1212_v51  ;;  %v1252_v6 = vpop.f32.mrb[13].mxu1 }
 0x3fd   : > { %v1260_v33 = vadd.f32 %v1252_v6, %v1213_v36  ;;  %v1254_v30 = vpop.f32.mrb[14].mxu1 }
 0x3fe   : > { %v1261_v55 = vadd.f32 %v1254_v30, %v1214_v50  ;;  %v1256_v9 = vpop.f32.mrb[15].mxu1 }
 0x3ff   : > { %v1262_v58 = vadd.f32 %v1256_v9, %v1215_v13 }
 0x400   : > { %1265 = vst [vmem:[#allocation4 + $0x10] sm:$0x1] %v1261_v55 }
 0x401   : > { %1266 = vst [vmem:[#allocation4 + $0x18] sm:$0x1] %v1262_v58 }
 0x407   : > { %v1277_v54 = vld [vmem:[#allocation4 + $0x10] sm:$0x1] }
 0x408   : > { %v1278_v32 = vld [vmem:[#allocation4 + $0x18] sm:$0x1]  ;;  %1713 = vrcp.f32 %v1277_v54 }
 0x409   : > { %1715 = vrcp.f32 %v1278_v32 }
 0x412   : > { %v1714_v57 = vpop.eup %1713 }
 0x413   : > { %v1716_v25 = vpop.eup %1715  ;;  %v1284_v12 = vrot.slane %v1714_v57, %v2802_v37 }
 0x414   : > { %v1288_v48 = vrot.slane %v1716_v25, %v2802_v37 }
 0x415   : > { %v1289_v39 = vmul.f32 %v1284_v12, %v1259_v53 }
 0x416   : > { %v1290_v46 = vmul.f32 %v1288_v48, %v1260_v33 }
 0x417   : > { %v1291_v59 = vpack.c.bf16 %v1289_v39, %v1289_v39 }
 0x418   : > { %v1292_v34 = vpack.c.bf16 %v1290_v46, %v1290_v46 }
 0x419   : > { %v1304_v29 = vsel %vm665_vm2, %v1291_v59, 0 }
 0x41a   : > { %1508 = vmatprep.subr.msk.bf16.mxu1 %vm665_vm2, %v1292_v34 }
 0x41b   : > { %1310 = vmatpush1.bf16.msra.mxu1 %v1304_v29 }
 0x41e   : > { %1509 = vmatmul.mubr.msk.bf16.vlgmr.msra.gmra.mrb[16].mxu1 %vm616_vm3, %v1293_v14 }
 0x4f1   : > { %v1343_v7 = vpop.f32.mrb[16].mxu1 }
 0x4f2   : > { %v1344_v38 = vadd.f32 %v1343_v7, %v1298_v61  ;;  %v1345_v21 = vpop.f32.mrb[17].mxu1 }
 0x4f3   : > { %v1346_v56 = vadd.f32 %v1345_v21, %v1298_v61  ;;  %v1347_v16 = vpop.f32.mrb[18].mxu1 }
 0x4f4   : > { %v1348_v8 = vpop.f32.mrb[19].mxu1 }
 0x4f5   : > { %v1352_v42 = vcombine.low %v1344_v38, %v1346_v56 }
 0x4f7   : > { %1354 = vst [vmem:[%s356_s24] sm:$0xff] %v1352_v42 }
 0x4f8   : > { %1730 = shalt.err (!%p1727_p5)
}
 0x4f9   : > { %s1731_s21 = scalar_lea.hbm %s2547_s12, 128  ;;  %s1735_s24 = scalar_lea.hbm %s2602_s8, 256 }
 0x4fa   : > { %p1732_p6 = scmp.ne.s32.totalorder %s2547_s12, %s1731_s21  ;;  %p1736_p10 = scmp.lt.u32.totalorder %s2547_s12, %s2602_s8 }
 0x4fb   : > { %p1737_p11 = scmp.lt.u32.totalorder %s1735_s24, %s1731_s21  ;;  %p1739_p13 = scmp.lt.u32.totalorder %s1731_s21, %s2547_s12 }
 0x4fc   : > { %p1733_p7 = pnand %p1732_p6, %p1887_p4 }
 0x4fd   : > { %p1738_p12 = por %p1737_p11, %p1736_p10 }
 0x4fe   : > { %p1734_p9 = pneg %p1733_p7 }
 0x4ff   : > { %p1740_p0 = por %p1739_p13, %p1738_p12 }
 0x501   : > { %p1741_p1 = pnand %p1740_p0, %p1734_p9 }
 0x503   : > { %1744 = shalt.err (!%p1741_p1)
}
 0x504   : > { %1521 = dma.vmem_to_hbm [thread:$0]  (%p1887_p4), %s2549_s25, 128, %s2547_s12, %s1356_s14  }
 0x505 PF: > { %p1527_p2 = scmp.ge.s32.totalorder %s1795_s10, 2  ;;  %s1384_s16 = sand.u32 1, %s1775_s27  }
 0x506   : > { %s1385_s30 = scalar_lea.sflag [#allocation6], %s1384_s16 }
 0x507   : > { %p1524_p3 = pnand %p1527_p2, %p1894_p8 }
 0x509   : > { %1770 = dma.done.wait (!%p1524_p3), %s1385_s30, 128  }
 0x50a   : > { %1772 = vsyncadd (!%p1524_p3), %s1385_s30, 4294967168  ;;  %s21_s10 = sadd.s32 1, %s1795_s10   ;;  %s2805_s27 = smov %s1779_s28 }
 0x50b   : > { %p18_p5 = scmp.ge.s32.totalorder %s21_s10, 4   ;;  %s2806_s28 = smov %s1783_s29 }
 0x50c   : > { %s2807_s29 = smov %s1900_s18  ;;  %s2808_s30 = smov %s1791_s9 }
 0x50d   : > { %s2809_s9 = smov %s2811_s13  ;;  %20 = sbr.rel (!%p18_p5) target bundleno = 4 (0x4), region = 98 }
 0x514   :  { %1390 = vsyncpa [#allocation6], 1 }
 0x515   :  { %1392 = vsyncpa [#allocation6 + $0x1], 1 }

</bundles_post_ra>
